<compile_context>
chip_gen: v5e
topology: v5e:2x2
jax: 0.10.0
libtpu: 0.0.40
codegen_flags: <defaults>
</compile_context>

<pallas_src>
import math

import jax
import jax.numpy as jnp
from jax import lax
from jax.experimental import pallas as pl
from jax.experimental.pallas import tpu as pltpu


# ---------------------------------------------------------------------------
# In-kernel helpers
# ---------------------------------------------------------------------------

def _layernorm(x, gamma, beta, eps=1e-12):
    """FastLayerNorm: (x - mean)/sqrt(var + eps) * gamma + beta over last dim."""
    u = jnp.mean(x, axis=-1, keepdims=True)
    d = x - u
    var = jnp.mean(d * d, axis=-1, keepdims=True)
    return d * lax.rsqrt(var + eps) * gamma + beta          # rsqrt -> EUP slot


def _gelu(x):
    """tanh-approximation GELU (matches the module's `gelu`)."""
    c = math.sqrt(2.0 / math.pi)
    return x * 0.5 * (1.0 + jnp.tanh(c * (x + 0.044715 * (x * x * x))))


def _rotate_half(x):
    """(-x2, x1) with x1, x2 = x.chunk(2, dim=-1)."""
    d = x.shape[-1] // 2
    return jnp.concatenate([-x[..., d:], x[..., :d]], axis=-1)


# ---------------------------------------------------------------------------
# Kernel: whole encoder, grid = (batch_blocks, num_layers)
# ---------------------------------------------------------------------------

def bert_encoder_kernel(
    # layer-invariant inputs (fetched once per batch block, resident in VMEM)
    emb_ref, maskb_ref, sin_ref, cos_ref, embg_ref, embb_ref,
    # per-layer weights, streamed one layer per grid step (double buffered)
    ln1g_ref, ln1b_ref,
    wq_ref, bq_ref, wk_ref, bk_ref, wv_ref, bv_ref, wo_ref, bo_ref,
    ln2g_ref, ln2b_ref,
    w1_ref, b1_ref, w2_ref, b2_ref,
    lnfg_ref, lnfb_ref,
    # output block, revisited across the layer axis (carried activations)
    o_ref,
):
    layer = pl.program_id(1)
    TB, S, H = o_ref.shape
    dk = sin_ref.shape[-1]
    nh = H // dk
    rows = TB * S
    inv_sqrt_dk = jnp.float32(1.0 / math.sqrt(dk))

    # Layer 0: initialise the carried activations with the embedding LayerNorm
    # (BertEmbeddings.LayerNorm; hidden dropout = identity in eval mode).
    @pl.when(layer == 0)
    def _():
        o_ref[...] = _layernorm(emb_ref[...], embg_ref[...], embb_ref[...])

    x = o_ref[...]                                           # (TB, S, H) f32 carry

    def _linear(v, w_ref, b_ref):
        # v: (rows, in); w_ref[0]: (out, in) = nn.Linear layout, streamed as-is.
        # Contract on the last dim of BOTH operands -> transposed-weight MXU
        # load, no wrapper .T / in-kernel transpose; accumulate in f32.
        y = lax.dot_general(v, w_ref[0],
                            dimension_numbers=(((1,), (1,)), ((), ())),
                            preferred_element_type=jnp.float32)
        return y + b_ref[0]

    # -------------------- self-attention sublayer (pre-norm) -----------------
    h = _layernorm(x, ln1g_ref[0], ln1b_ref[0]).reshape(rows, H)
    q2 = _linear(h, wq_ref, bq_ref)
    k2 = _linear(h, wk_ref, bk_ref)
    v2 = _linear(h, wv_ref, bv_ref)

    sin = sin_ref[...][None]                                 # (1, S, dk)
    cos = cos_ref[...][None]
    bias = maskb_ref[...]                                    # (TB, 1, S) key mask bias

    head_ctx = []
    for hd in range(nh):                                     # static unroll (nh small)
        cols = slice(hd * dk, (hd + 1) * dk)
        qh = q2[:, cols].reshape(TB, S, dk)
        kh = k2[:, cols].reshape(TB, S, dk)
        vh = v2[:, cols].reshape(TB, S, dk)
        # Rotary position embedding (full-width variant used by the module).
        qh = qh * cos + _rotate_half(qh) * sin
        kh = kh * cos + _rotate_half(kh) * sin
        s = jnp.einsum('bqd,bkd->bqk', qh, kh,
                       preferred_element_type=jnp.float32) * inv_sqrt_dk + bias
        s = s - jnp.max(s, axis=-1, keepdims=True)
        p = jnp.exp(s)
        p = p / jnp.sum(p, axis=-1, keepdims=True)
        head_ctx.append(jnp.einsum('bqk,bkd->bqd', p, vh,
                                   preferred_element_type=jnp.float32))
    ctx = jnp.concatenate(head_ctx, axis=-1).reshape(rows, H)
    x = x + _linear(ctx, wo_ref, bo_ref).reshape(TB, S, H)

    # -------------------- feed-forward sublayer (pre-norm) -------------------
    h = _layernorm(x, ln2g_ref[0], ln2b_ref[0]).reshape(rows, H)
    f = _gelu(_linear(h, w1_ref, b1_ref))                    # (rows, I)
    x = x + _linear(f, w2_ref, b2_ref).reshape(TB, S, H)

    # -------------------- TransformerBlock.final_norm ------------------------
    o_ref[...] = _layernorm(x, lnfg_ref[0], lnfb_ref[0])


# ---------------------------------------------------------------------------
# Wrappers
# ---------------------------------------------------------------------------

def bert_encoder(emb, mask_bias, sin, cos, params, *, batch_block=None):
    B, S, H = emb.shape
    L, I = params['w1'].shape[0], params['w1'].shape[1]
    assert S % 8 == 0 and H % 128 == 0 and I % 128 == 0, (
        "demo wrapper assumes sublane/lane-aligned S, H, intermediate")
    TB = B if batch_block is None else min(batch_block, B)
    assert B % TB == 0
    grid = (B // TB, L)

    def v3(a):                        # (L, d) -> (L, 1, d): last two block dims
        return a.reshape(L, 1, -1)    # equal the array dims (no (8,128) issue)

    per_layer_inputs = [
        v3(params['ln1_g']), v3(params['ln1_b']),
        params['wq'], v3(params['bq']),
        params['wk'], v3(params['bk']),
        params['wv'], v3(params['bv']),
        params['wo'], v3(params['bo']),
        v3(params['ln2_g']), v3(params['ln2_b']),
        params['w1'], v3(params['b1']),
        params['w2'], v3(params['b2']),
        v3(params['lnf_g']), v3(params['lnf_b']),
    ]
    inputs = [
        emb, mask_bias, sin, cos,
        params['emb_ln_g'].reshape(1, H), params['emb_ln_b'].reshape(1, H),
    ] + per_layer_inputs

    def batch_spec(shape):            # varies with batch block, layer-invariant
        return pl.BlockSpec(shape, lambda b, l: (b,) + (0,) * (len(shape) - 1))

    def shared_spec(shape):           # fetched once, resident for the whole grid
        return pl.BlockSpec(shape, lambda b, l: (0,) * len(shape))

    def layer_spec(a):                # one layer-slab per grid step (streamed)
        return pl.BlockSpec((1,) + a.shape[1:], lambda b, l: (l, 0, 0))

    in_specs = [
        batch_spec((TB, S, H)),       # summed embeddings
        batch_spec((TB, 1, S)),       # additive key mask
        shared_spec(sin.shape),       # RoPE sin
        shared_spec(cos.shape),       # RoPE cos
        shared_spec((1, H)),          # embedding LN gamma (f32)
        shared_spec((1, H)),          # embedding LN beta  (f32)
    ] + [layer_spec(a) for a in per_layer_inputs]

    dk = sin.shape[-1]
    nh = H // dk
    flops = L * (2 * B * S * H * H * 4 + 2 * B * S * H * I * 2
                 + 2 * B * nh * S * S * dk * 2)
    transcendentals = L * (B * S * I + B * nh * S * S)
    bytes_accessed = (sum(int(a.size) * a.dtype.itemsize for a in inputs)
                      + B * S * H * emb.dtype.itemsize)

    return pl.pallas_call(
        bert_encoder_kernel,
        out_shape=jax.ShapeDtypeStruct((B, S, H), jnp.float32),
        grid_spec=pltpu.PrefetchScalarGridSpec(
            num_scalar_prefetch=0,
            grid=grid,
            in_specs=in_specs,
            out_specs=pl.BlockSpec((TB, S, H), lambda b, l: (b, 0, 0)),
        ),
        compiler_params=pltpu.CompilerParams(
            # Independent batch blocks -> "parallel" (v7x dual-TC sharding);
            # the layer axis carries the activations -> "arbitrary", last.
            dimension_semantics=("parallel", "arbitrary"),
        ),
        cost_estimate=pl.CostEstimate(flops=flops,
                                      transcendentals=transcendentals,
                                      bytes_accessed=bytes_accessed),
    )(*inputs)


def bert_forward(input_ids, token_type_ids, params, *, num_heads, batch_block=None):
    """Eval-mode BERT.forward: returns (sequence_output, sequence_output[:, 0])."""
    B, S = input_ids.shape
    H = params['word_emb'].shape[1]
    dk = H // num_heads
    if token_type_ids is None:
        token_type_ids = jnp.zeros_like(input_ids)

    # Embedding-table gathers (data dependent) stay in the wrapper.
    emb = params['word_emb'][input_ids] + params['tok_emb'][token_type_ids]

    # Default attention mask from BERT.forward: key k is valid iff ids[b, k] > 1
    # (broadcast over heads and query positions); large-negative additive bias.
    mask_bias = jnp.where(input_ids > 1, 0.0, -1e9).astype(jnp.float32)[:, None, :]

    # RoPE tables (RotaryPositionalEmbedding.forward): full-width inv_freq.
    t = jnp.arange(S, dtype=jnp.float32)
    inv_freq = 1.0 / (10000.0 ** (jnp.arange(dk, dtype=jnp.float32) / dk))
    freqs = t[:, None] * inv_freq[None, :]
    sin, cos = jnp.sin(freqs), jnp.cos(freqs)

    seq_out = bert_encoder(emb.astype(jnp.float32), mask_bias, sin, cos, params,
                           batch_block=batch_block)
    return seq_out, seq_out[:, 0]


# ---------------------------------------------------------------------------
# Pure-JAX reference (mirrors the PyTorch module in eval mode, f32)
# ---------------------------------------------------------------------------

def _layernorm_ref(x, g, b, eps=1e-12):
    u = x.mean(-1, keepdims=True)
    s = ((x - u) ** 2).mean(-1, keepdims=True)
    return g * ((x - u) / jnp.sqrt(s + eps)) + b


def bert_reference(input_ids, token_type_ids, params, num_heads):
    B, S = input_ids.shape
    H = params['word_emb'].shape[1]
    dk = H // num_heads
    L = params['wq'].shape[0]

    x = params['word_emb'][input_ids] + params['tok_emb'][token_type_ids]
    x = _layernorm_ref(x, params['emb_ln_g'], params['emb_ln_b'])

    bias = jnp.where(input_ids > 1, 0.0, -1e9).astype(jnp.float32)[:, None, None, :]
    t = jnp.arange(S, dtype=jnp.float32)
    inv_freq = 1.0 / (10000.0 ** (jnp.arange(dk, dtype=jnp.float32) / dk))
    freqs = t[:, None] * inv_freq[None, :]
    sin = jnp.sin(freqs)[None, None]
    cos = jnp.cos(freqs)[None, None]

    def rot_half(a):
        d = a.shape[-1] // 2
        return jnp.concatenate([-a[..., d:], a[..., :d]], axis=-1)

    def gelu_ref(a):
        return a * 0.5 * (1.0 + jnp.tanh(math.sqrt(2.0 / math.pi)
                                         * (a + 0.044715 * (a * a * a))))

    for l in range(L):
        h = _layernorm_ref(x, params['ln1_g'][l], params['ln1_b'][l])
        q = h @ params['wq'][l].T + params['bq'][l]
        k = h @ params['wk'][l].T + params['bk'][l]
        v = h @ params['wv'][l].T + params['bv'][l]

        def split(a):
            return a.reshape(B, S, num_heads, dk).transpose(0, 2, 1, 3)

        q, k, v = split(q), split(k), split(v)
        q = q * cos + rot_half(q) * sin
        k = k * cos + rot_half(k) * sin
        s = jnp.einsum('bhqd,bhkd->bhqk', q, k) / math.sqrt(dk) + bias
        p = jax.nn.softmax(s, axis=-1)
        ctx = jnp.einsum('bhqk,bhkd->bhqd', p, v)
        ctx = ctx.transpose(0, 2, 1, 3).reshape(B, S, H)
        x = x + (ctx @ params['wo'][l].T + params['bo'][l])

        h = _layernorm_ref(x, params['ln2_g'][l], params['ln2_b'][l])
        f = gelu_ref(h @ params['w1'][l].T + params['b1'][l])
        x = x + (f @ params['w2'][l].T + params['b2'][l])

        x = _layernorm_ref(x, params['lnf_g'][l], params['lnf_b'][l])

    return x, x[:, 0]


# ---------------------------------------------------------------------------
# Demo
# ---------------------------------------------------------------------------

if __name__ == "__main__":
    # Small, tiling-friendly config: S multiple of 8, H / intermediate multiples of 128.
    B, S, H, I, L, NH, V = 2, 8, 128, 512, 2, 2, 32

    key = jax.random.PRNGKey(0)
    keys = iter(jax.random.split(key, 40))
    nk = lambda: next(keys)
    rnd = lambda shape, scale: scale * jax.random.normal(nk(), shape, dtype=jnp.float32)

    params = dict(
        word_emb=rnd((V, H), 1.0),
        tok_emb=rnd((2, H), 1.0),
        emb_ln_g=1.0 + rnd((H,), 0.1), emb_ln_b=rnd((H,), 0.1),
        ln1_g=1.0 + rnd((L, H), 0.1), ln1_b=rnd((L, H), 0.1),
        wq=rnd((L, H, H), 0.05), bq=rnd((L, H), 0.05),
        wk=rnd((L, H, H), 0.05), bk=rnd((L, H), 0.05),
        wv=rnd((L, H, H), 0.05), bv=rnd((L, H), 0.05),
        wo=rnd((L, H, H), 0.05), bo=rnd((L, H), 0.05),
        ln2_g=1.0 + rnd((L, H), 0.1), ln2_b=rnd((L, H), 0.1),
        w1=rnd((L, I, H), 0.05), b1=rnd((L, I), 0.05),
        w2=rnd((L, H, I), 0.05), b2=rnd((L, H), 0.05),
        lnf_g=1.0 + rnd((L, H), 0.1), lnf_b=rnd((L, H), 0.1),
    )

    input_ids = jax.random.randint(nk(), (B, S), 2, V)
    input_ids = input_ids.at[:, -1].set(0)       # padding token -> masked key position
    token_type_ids = jax.random.randint(nk(), (B, S), 0, 2)

    seq_out, pooled = bert_forward(input_ids, token_type_ids, params, num_heads=NH)
    seq_out = jax.block_until_ready(seq_out)
    pooled = jax.block_until_ready(pooled)

    with jax.default_matmul_precision("highest"):
        ref_seq, ref_pooled = bert_reference(input_ids, token_type_ids, params, NH)

    assert seq_out.shape == (B, S, H) and pooled.shape == (B, H)
    err_seq = float(jnp.max(jnp.abs(seq_out - ref_seq)))
    err_pool = float(jnp.max(jnp.abs(pooled - ref_pooled)))
    assert jnp.allclose(seq_out, ref_seq, atol=3e-2, rtol=3e-2), (
        "sequence output max abs err = %f" % err_seq)
    assert jnp.allclose(pooled, ref_pooled, atol=3e-2, rtol=3e-2), (
        "first-token output max abs err = %f" % err_pool)

    print("KERNEL_OK")
</pallas_src>

<mosaic_0001>
module attributes {stable_mosaic.version = 11 : i64} {
  func.func @bert_encoder_kernel(%arg0: i32, %arg1: i32, %arg2: memref<2x8x128xf32, #tpu.memory_space<vmem>>, %arg3: memref<2x1x8xf32, #tpu.memory_space<vmem>>, %arg4: memref<8x64xf32, #tpu.memory_space<vmem>>, %arg5: memref<8x64xf32, #tpu.memory_space<vmem>>, %arg6: memref<1x128xf32, #tpu.memory_space<vmem>>, %arg7: memref<1x128xf32, #tpu.memory_space<vmem>>, %arg8: memref<1x1x128xf32, #tpu.memory_space<vmem>>, %arg9: memref<1x1x128xf32, #tpu.memory_space<vmem>>, %arg10: memref<1x128x128xf32, #tpu.memory_space<vmem>>, %arg11: memref<1x1x128xf32, #tpu.memory_space<vmem>>, %arg12: memref<1x128x128xf32, #tpu.memory_space<vmem>>, %arg13: memref<1x1x128xf32, #tpu.memory_space<vmem>>, %arg14: memref<1x128x128xf32, #tpu.memory_space<vmem>>, %arg15: memref<1x1x128xf32, #tpu.memory_space<vmem>>, %arg16: memref<1x128x128xf32, #tpu.memory_space<vmem>>, %arg17: memref<1x1x128xf32, #tpu.memory_space<vmem>>, %arg18: memref<1x1x128xf32, #tpu.memory_space<vmem>>, %arg19: memref<1x1x128xf32, #tpu.memory_space<vmem>>, %arg20: memref<1x512x128xf32, #tpu.memory_space<vmem>>, %arg21: memref<1x1x512xf32, #tpu.memory_space<vmem>>, %arg22: memref<1x128x512xf32, #tpu.memory_space<vmem>>, %arg23: memref<1x1x128xf32, #tpu.memory_space<vmem>>, %arg24: memref<1x1x128xf32, #tpu.memory_space<vmem>>, %arg25: memref<1x1x128xf32, #tpu.memory_space<vmem>>, %arg26: memref<2x8x128xf32, #tpu.memory_space<vmem>>) attributes {dimension_semantics = [#tpu.dimension_semantics<parallel>, #tpu.dimension_semantics<arbitrary>], iteration_bounds = array<i64: 1, 2>, scalar_prefetch = 0 : i64, scratch_operands = 0 : i64, tpu.core_type = #tpu.core_type<tc>, window_params = [{transform_indices = @transform_0, window_bounds = array<i64: 2, 8, 128>}, {transform_indices = @transform_1, window_bounds = array<i64: 2, 1, 8>}, {pipeline_mode = #tpu.pipeline_mode<synchronous>, transform_indices = @transform_2, window_bounds = array<i64: 8, 64>}, {pipeline_mode = #tpu.pipeline_mode<synchronous>, transform_indices = @transform_3, window_bounds = array<i64: 8, 64>}, {pipeline_mode = #tpu.pipeline_mode<synchronous>, transform_indices = @transform_4, window_bounds = array<i64: 1, 128>}, {pipeline_mode = #tpu.pipeline_mode<synchronous>, transform_indices = @transform_5, window_bounds = array<i64: 1, 128>}, {transform_indices = @transform_6, window_bounds = array<i64: 1, 1, 128>}, {transform_indices = @transform_7, window_bounds = array<i64: 1, 1, 128>}, {transform_indices = @transform_8, window_bounds = array<i64: 1, 128, 128>}, {transform_indices = @transform_9, window_bounds = array<i64: 1, 1, 128>}, {transform_indices = @transform_10, window_bounds = array<i64: 1, 128, 128>}, {transform_indices = @transform_11, window_bounds = array<i64: 1, 1, 128>}, {transform_indices = @transform_12, window_bounds = array<i64: 1, 128, 128>}, {transform_indices = @transform_13, window_bounds = array<i64: 1, 1, 128>}, {transform_indices = @transform_14, window_bounds = array<i64: 1, 128, 128>}, {transform_indices = @transform_15, window_bounds = array<i64: 1, 1, 128>}, {transform_indices = @transform_16, window_bounds = array<i64: 1, 1, 128>}, {transform_indices = @transform_17, window_bounds = array<i64: 1, 1, 128>}, {transform_indices = @transform_18, window_bounds = array<i64: 1, 512, 128>}, {transform_indices = @transform_19, window_bounds = array<i64: 1, 1, 512>}, {transform_indices = @transform_20, window_bounds = array<i64: 1, 128, 512>}, {transform_indices = @transform_21, window_bounds = array<i64: 1, 1, 128>}, {transform_indices = @transform_22, window_bounds = array<i64: 1, 1, 128>}, {transform_indices = @transform_23, window_bounds = array<i64: 1, 1, 128>}, {transform_indices = @transform_24, window_bounds = array<i64: 2, 8, 128>}]} {
    %c0_i32 = arith.constant 0 : i32
    %0 = arith.cmpi eq, %arg1, %c0_i32 : i32
    %1 = arith.extui %0 : i1 to i32
    %c0_i32_0 = arith.constant 0 : i32
    %2 = arith.cmpi ne, %1, %c0_i32_0 : i32
    scf.if %2 {
      %c0_105 = arith.constant 0 : index
      %c0_106 = arith.constant 0 : index
      %c0_107 = arith.constant 0 : index
      %233 = vector.load %arg2[%c0_105, %c0_106, %c0_107] : memref<2x8x128xf32, #tpu.memory_space<vmem>>, vector<2x8x128xf32>
      %c0_108 = arith.constant 0 : index
      %c0_109 = arith.constant 0 : index
      %234 = vector.load %arg6[%c0_108, %c0_109] : memref<1x128xf32, #tpu.memory_space<vmem>>, vector<1x128xf32>
      %c0_110 = arith.constant 0 : index
      %c0_111 = arith.constant 0 : index
      %235 = vector.load %arg7[%c0_110, %c0_111] : memref<1x128xf32, #tpu.memory_space<vmem>>, vector<1x128xf32>
      %cst_112 = arith.constant dense<0.000000e+00> : vector<2x8xf32>
      %236 = vector.multi_reduction <add>, %233, %cst_112 [2] : vector<2x8x128xf32> to vector<2x8xf32>
      %237 = vector.shape_cast %236 : vector<2x8xf32> to vector<2x8x1xf32>
      %cst_113 = arith.constant 1.280000e+02 : f32
      %238 = vector.broadcast %cst_113 : f32 to vector<2x8x1xf32>
      %239 = arith.divf %237, %238 : vector<2x8x1xf32>
      %240 = vector.broadcast %239 : vector<2x8x1xf32> to vector<2x8x128xf32>
      %241 = arith.subf %233, %240 : vector<2x8x128xf32>
      %242 = arith.mulf %241, %241 : vector<2x8x128xf32>
      %cst_114 = arith.constant dense<0.000000e+00> : vector<2x8xf32>
      %243 = vector.multi_reduction <add>, %242, %cst_114 [2] : vector<2x8x128xf32> to vector<2x8xf32>
      %244 = vector.shape_cast %243 : vector<2x8xf32> to vector<2x8x1xf32>
      %cst_115 = arith.constant 1.280000e+02 : f32
      %245 = vector.broadcast %cst_115 : f32 to vector<2x8x1xf32>
      %246 = arith.divf %244, %245 : vector<2x8x1xf32>
      %cst_116 = arith.constant 9.99999996E-13 : f32
      %247 = vector.broadcast %cst_116 : f32 to vector<2x8x1xf32>
      %248 = arith.addf %246, %247 : vector<2x8x1xf32>
      %249 = math.rsqrt %248 : vector<2x8x1xf32>
      %250 = vector.broadcast %249 : vector<2x8x1xf32> to vector<2x8x128xf32>
      %251 = arith.mulf %241, %250 : vector<2x8x128xf32>
      %252 = vector.shape_cast %234 : vector<1x128xf32> to vector<1x1x128xf32>
      %253 = vector.broadcast %252 : vector<1x1x128xf32> to vector<2x8x128xf32>
      %254 = arith.mulf %251, %253 : vector<2x8x128xf32>
      %255 = vector.shape_cast %235 : vector<1x128xf32> to vector<1x1x128xf32>
      %256 = vector.broadcast %255 : vector<1x1x128xf32> to vector<2x8x128xf32>
      %257 = arith.addf %254, %256 : vector<2x8x128xf32>
      %c0_117 = arith.constant 0 : index
      %c0_118 = arith.constant 0 : index
      %c0_119 = arith.constant 0 : index
      %258 = vector.load %arg26[%c0_117, %c0_118, %c0_119] : memref<2x8x128xf32, #tpu.memory_space<vmem>>, vector<2x8x128xf32>
      tpu.vector_store %arg26[%c0_117, %c0_118, %c0_119], %257 {strides = array<i32>} : memref<2x8x128xf32, #tpu.memory_space<vmem>>, vector<2x8x128xf32>,
    } else {
    }
    %c0 = arith.constant 0 : index
    %c0_1 = arith.constant 0 : index
    %c0_2 = arith.constant 0 : index
    %3 = vector.load %arg26[%c0, %c0_1, %c0_2] : memref<2x8x128xf32, #tpu.memory_space<vmem>>, vector<2x8x128xf32>
    %c0_3 = arith.constant 0 : index
    %c0_4 = arith.constant 0 : index
    %c0_5 = arith.constant 0 : index
    %4 = vector.load %arg8[%c0_3, %c0_4, %c0_5] : memref<1x1x128xf32, #tpu.memory_space<vmem>>, vector<1x1x128xf32>
    %5 = vector.shape_cast %4 : vector<1x1x128xf32> to vector<1x128xf32>
    %c0_6 = arith.constant 0 : index
    %c0_7 = arith.constant 0 : index
    %c0_8 = arith.constant 0 : index
    %6 = vector.load %arg9[%c0_6, %c0_7, %c0_8] : memref<1x1x128xf32, #tpu.memory_space<vmem>>, vector<1x1x128xf32>
    %7 = vector.shape_cast %6 : vector<1x1x128xf32> to vector<1x128xf32>
    %cst = arith.constant dense<0.000000e+00> : vector<2x8xf32>
    %8 = vector.multi_reduction <add>, %3, %cst [2] : vector<2x8x128xf32> to vector<2x8xf32>
    %9 = vector.shape_cast %8 : vector<2x8xf32> to vector<2x8x1xf32>
    %cst_9 = arith.constant 1.280000e+02 : f32
    %10 = vector.broadcast %cst_9 : f32 to vector<2x8x1xf32>
    %11 = arith.divf %9, %10 : vector<2x8x1xf32>
    %12 = vector.broadcast %11 : vector<2x8x1xf32> to vector<2x8x128xf32>
    %13 = arith.subf %3, %12 : vector<2x8x128xf32>
    %14 = arith.mulf %13, %13 : vector<2x8x128xf32>
    %cst_10 = arith.constant dense<0.000000e+00> : vector<2x8xf32>
    %15 = vector.multi_reduction <add>, %14, %cst_10 [2] : vector<2x8x128xf32> to vector<2x8xf32>
    %16 = vector.shape_cast %15 : vector<2x8xf32> to vector<2x8x1xf32>
    %cst_11 = arith.constant 1.280000e+02 : f32
    %17 = vector.broadcast %cst_11 : f32 to vector<2x8x1xf32>
    %18 = arith.divf %16, %17 : vector<2x8x1xf32>
    %cst_12 = arith.constant 9.99999996E-13 : f32
    %19 = vector.broadcast %cst_12 : f32 to vector<2x8x1xf32>
    %20 = arith.addf %18, %19 : vector<2x8x1xf32>
    %21 = math.rsqrt %20 : vector<2x8x1xf32>
    %22 = vector.broadcast %21 : vector<2x8x1xf32> to vector<2x8x128xf32>
    %23 = arith.mulf %13, %22 : vector<2x8x128xf32>
    %24 = vector.shape_cast %5 : vector<1x128xf32> to vector<1x1x128xf32>
    %25 = vector.broadcast %24 : vector<1x1x128xf32> to vector<2x8x128xf32>
    %26 = arith.mulf %23, %25 : vector<2x8x128xf32>
    %27 = vector.shape_cast %7 : vector<1x128xf32> to vector<1x1x128xf32>
    %28 = vector.broadcast %27 : vector<1x1x128xf32> to vector<2x8x128xf32>
    %29 = arith.addf %26, %28 : vector<2x8x128xf32>
    %30 = vector.shape_cast %29 : vector<2x8x128xf32> to vector<16x128xf32>
    %c0_13 = arith.constant 0 : index
    %c0_14 = arith.constant 0 : index
    %c0_15 = arith.constant 0 : index
    %31 = vector.load %arg10[%c0_13, %c0_14, %c0_15] : memref<1x128x128xf32, #tpu.memory_space<vmem>>, vector<1x128x128xf32>
    %32 = vector.shape_cast %31 : vector<1x128x128xf32> to vector<128x128xf32>
    %cst_16 = arith.constant dense<0.000000e+00> : vector<16x128xf32>
    %33 = tpu.matmul %30, %32, %cst_16 {dimension_numbers = #tpu.dot_dimension_numbers<[1], [1], [0], [0], [0, 0, 1, 0], [], []>} : vector<16x128xf32>, vector<128x128xf32>, vector<16x128xf32> -> vector<16x128xf32>
    %c0_17 = arith.constant 0 : index
    %c0_18 = arith.constant 0 : index
    %c0_19 = arith.constant 0 : index
    %34 = vector.load %arg11[%c0_17, %c0_18, %c0_19] : memref<1x1x128xf32, #tpu.memory_space<vmem>>, vector<1x1x128xf32>
    %35 = vector.shape_cast %34 : vector<1x1x128xf32> to vector<1x128xf32>
    %36 = vector.broadcast %35 : vector<1x128xf32> to vector<16x128xf32>
    %37 = arith.addf %33, %36 : vector<16x128xf32>
    %c0_20 = arith.constant 0 : index
    %c0_21 = arith.constant 0 : index
    %c0_22 = arith.constant 0 : index
    %38 = vector.load %arg12[%c0_20, %c0_21, %c0_22] : memref<1x128x128xf32, #tpu.memory_space<vmem>>, vector<1x128x128xf32>
    %39 = vector.shape_cast %38 : vector<1x128x128xf32> to vector<128x128xf32>
    %cst_23 = arith.constant dense<0.000000e+00> : vector<16x128xf32>
    %40 = tpu.matmul %30, %39, %cst_23 {dimension_numbers = #tpu.dot_dimension_numbers<[1], [1], [0], [0], [0, 0, 1, 0], [], []>} : vector<16x128xf32>, vector<128x128xf32>, vector<16x128xf32> -> vector<16x128xf32>
    %c0_24 = arith.constant 0 : index
    %c0_25 = arith.constant 0 : index
    %c0_26 = arith.constant 0 : index
    %41 = vector.load %arg13[%c0_24, %c0_25, %c0_26] : memref<1x1x128xf32, #tpu.memory_space<vmem>>, vector<1x1x128xf32>
    %42 = vector.shape_cast %41 : vector<1x1x128xf32> to vector<1x128xf32>
    %43 = vector.broadcast %42 : vector<1x128xf32> to vector<16x128xf32>
    %44 = arith.addf %40, %43 : vector<16x128xf32>
    %c0_27 = arith.constant 0 : index
    %c0_28 = arith.constant 0 : index
    %c0_29 = arith.constant 0 : index
    %45 = vector.load %arg14[%c0_27, %c0_28, %c0_29] : memref<1x128x128xf32, #tpu.memory_space<vmem>>, vector<1x128x128xf32>
    %46 = vector.shape_cast %45 : vector<1x128x128xf32> to vector<128x128xf32>
    %cst_30 = arith.constant dense<0.000000e+00> : vector<16x128xf32>
    %47 = tpu.matmul %30, %46, %cst_30 {dimension_numbers = #tpu.dot_dimension_numbers<[1], [1], [0], [0], [0, 0, 1, 0], [], []>} : vector<16x128xf32>, vector<128x128xf32>, vector<16x128xf32> -> vector<16x128xf32>
    %c0_31 = arith.constant 0 : index
    %c0_32 = arith.constant 0 : index
    %c0_33 = arith.constant 0 : index
    %48 = vector.load %arg15[%c0_31, %c0_32, %c0_33] : memref<1x1x128xf32, #tpu.memory_space<vmem>>, vector<1x1x128xf32>
    %49 = vector.shape_cast %48 : vector<1x1x128xf32> to vector<1x128xf32>
    %50 = vector.broadcast %49 : vector<1x128xf32> to vector<16x128xf32>
    %51 = arith.addf %47, %50 : vector<16x128xf32>
    %c0_34 = arith.constant 0 : index
    %c0_35 = arith.constant 0 : index
    %52 = vector.load %arg4[%c0_34, %c0_35] : memref<8x64xf32, #tpu.memory_space<vmem>>, vector<8x64xf32>
    %53 = vector.shape_cast %52 : vector<8x64xf32> to vector<1x8x64xf32>
    %c0_36 = arith.constant 0 : index
    %c0_37 = arith.constant 0 : index
    %54 = vector.load %arg5[%c0_36, %c0_37] : memref<8x64xf32, #tpu.memory_space<vmem>>, vector<8x64xf32>
    %55 = vector.shape_cast %54 : vector<8x64xf32> to vector<1x8x64xf32>
    %c0_38 = arith.constant 0 : index
    %c0_39 = arith.constant 0 : index
    %c0_40 = arith.constant 0 : index
    %56 = vector.load %arg3[%c0_38, %c0_39, %c0_40] : memref<2x1x8xf32, #tpu.memory_space<vmem>>, vector<2x1x8xf32>
    %57 = vector.extract_strided_slice %37 {offsets = [0, 0], sizes = [16, 64], strides = [1, 1]} : vector<16x128xf32> to vector<16x64xf32>
    %58 = vector.shape_cast %57 : vector<16x64xf32> to vector<2x8x64xf32>
    %59 = vector.extract_strided_slice %44 {offsets = [0, 0], sizes = [16, 64], strides = [1, 1]} : vector<16x128xf32> to vector<16x64xf32>
    %60 = vector.shape_cast %59 : vector<16x64xf32> to vector<2x8x64xf32>
    %61 = vector.extract_strided_slice %51 {offsets = [0, 0], sizes = [16, 64], strides = [1, 1]} : vector<16x128xf32> to vector<16x64xf32>
    %62 = vector.shape_cast %61 : vector<16x64xf32> to vector<2x8x64xf32>
    %63 = vector.broadcast %55 : vector<1x8x64xf32> to vector<2x8x64xf32>
    %64 = arith.mulf %58, %63 : vector<2x8x64xf32>
    %65 = vector.extract_strided_slice %58 {offsets = [0, 0, 32], sizes = [2, 8, 32], strides = [1, 1, 1]} : vector<2x8x64xf32> to vector<2x8x32xf32>
    %cst_41 = arith.constant 0.000000e+00 : f32
    %66 = vector.broadcast %cst_41 : f32 to vector<2x8x32xf32>
    %67 = arith.subf %66, %65 : vector<2x8x32xf32>
    %68 = vector.extract_strided_slice %58 {offsets = [0, 0, 0], sizes = [2, 8, 32], strides = [1, 1, 1]} : vector<2x8x64xf32> to vector<2x8x32xf32>
    %69 = tpu.concatenate %67, %68 in 2 : vector<2x8x32xf32>, vector<2x8x32xf32> -> vector<2x8x64xf32>
    %70 = vector.broadcast %53 : vector<1x8x64xf32> to vector<2x8x64xf32>
    %71 = arith.mulf %69, %70 : vector<2x8x64xf32>
    %72 = arith.addf %64, %71 : vector<2x8x64xf32>
    %73 = vector.broadcast %55 : vector<1x8x64xf32> to vector<2x8x64xf32>
    %74 = arith.mulf %60, %73 : vector<2x8x64xf32>
    %75 = vector.extract_strided_slice %60 {offsets = [0, 0, 32], sizes = [2, 8, 32], strides = [1, 1, 1]} : vector<2x8x64xf32> to vector<2x8x32xf32>
    %cst_42 = arith.constant 0.000000e+00 : f32
    %76 = vector.broadcast %cst_42 : f32 to vector<2x8x32xf32>
    %77 = arith.subf %76, %75 : vector<2x8x32xf32>
    %78 = vector.extract_strided_slice %60 {offsets = [0, 0, 0], sizes = [2, 8, 32], strides = [1, 1, 1]} : vector<2x8x64xf32> to vector<2x8x32xf32>
    %79 = tpu.concatenate %77, %78 in 2 : vector<2x8x32xf32>, vector<2x8x32xf32> -> vector<2x8x64xf32>
    %80 = vector.broadcast %53 : vector<1x8x64xf32> to vector<2x8x64xf32>
    %81 = arith.mulf %79, %80 : vector<2x8x64xf32>
    %82 = arith.addf %74, %81 : vector<2x8x64xf32>
    "tpu.trace_start"() <{level = 10 : i32, message = "bqd,bkd->bqk"}> : () -> ()
    %cst_43 = arith.constant dense<0.000000e+00> : vector<2x8x8xf32>
    %83 = tpu.matmul %72, %82, %cst_43 {dimension_numbers = #tpu.dot_dimension_numbers<[2], [2], [1], [1], [0, 0, 0, 1, 1, 1], [0], [0]>} : vector<2x8x64xf32>, vector<2x8x64xf32>, vector<2x8x8xf32> -> vector<2x8x8xf32>
    "tpu.trace_stop"() : () -> ()
    %cst_44 = arith.constant 1.250000e-01 : f32
    %84 = vector.broadcast %cst_44 : f32 to vector<2x8x8xf32>
    %85 = arith.mulf %83, %84 : vector<2x8x8xf32>
    %86 = vector.broadcast %56 : vector<2x1x8xf32> to vector<2x8x8xf32>
    %87 = arith.addf %85, %86 : vector<2x8x8xf32>
    %cst_45 = arith.constant dense<0xFF800000> : vector<2x8xf32>
    %88 = vector.multi_reduction <maximumf>, %87, %cst_45 [2] : vector<2x8x8xf32> to vector<2x8xf32>
    %89 = vector.shape_cast %88 : vector<2x8xf32> to vector<2x8x1xf32>
    %90 = vector.broadcast %89 : vector<2x8x1xf32> to vector<2x8x8xf32>
    %91 = arith.subf %87, %90 : vector<2x8x8xf32>
    %92 = math.exp %91 : vector<2x8x8xf32>
    %cst_46 = arith.constant dense<0.000000e+00> : vector<2x8xf32>
    %93 = vector.multi_reduction <add>, %92, %cst_46 [2] : vector<2x8x8xf32> to vector<2x8xf32>
    %94 = vector.shape_cast %93 : vector<2x8xf32> to vector<2x8x1xf32>
    %95 = vector.broadcast %94 : vector<2x8x1xf32> to vector<2x8x8xf32>
    %96 = arith.divf %92, %95 : vector<2x8x8xf32>
    "tpu.trace_start"() <{level = 10 : i32, message = "bqk,bkd->bqd"}> : () -> ()
    %cst_47 = arith.constant dense<0.000000e+00> : vector<2x8x64xf32>
    %97 = tpu.matmul %96, %62, %cst_47 {dimension_numbers = #tpu.dot_dimension_numbers<[2], [1], [1], [2], [0, 0, 0, 1, 1, 2], [0], [0]>} : vector<2x8x8xf32>, vector<2x8x64xf32>, vector<2x8x64xf32> -> vector<2x8x64xf32>
    "tpu.trace_stop"() : () -> ()
    %98 = vector.extract_strided_slice %37 {offsets = [0, 64], sizes = [16, 64], strides = [1, 1]} : vector<16x128xf32> to vector<16x64xf32>
    %99 = vector.shape_cast %98 : vector<16x64xf32> to vector<2x8x64xf32>
    %100 = vector.extract_strided_slice %44 {offsets = [0, 64], sizes = [16, 64], strides = [1, 1]} : vector<16x128xf32> to vector<16x64xf32>
    %101 = vector.shape_cast %100 : vector<16x64xf32> to vector<2x8x64xf32>
    %102 = vector.extract_strided_slice %51 {offsets = [0, 64], sizes = [16, 64], strides = [1, 1]} : vector<16x128xf32> to vector<16x64xf32>
    %103 = vector.shape_cast %102 : vector<16x64xf32> to vector<2x8x64xf32>
    %104 = vector.broadcast %55 : vector<1x8x64xf32> to vector<2x8x64xf32>
    %105 = arith.mulf %99, %104 : vector<2x8x64xf32>
    %106 = vector.extract_strided_slice %99 {offsets = [0, 0, 32], sizes = [2, 8, 32], strides = [1, 1, 1]} : vector<2x8x64xf32> to vector<2x8x32xf32>
    %cst_48 = arith.constant 0.000000e+00 : f32
    %107 = vector.broadcast %cst_48 : f32 to vector<2x8x32xf32>
    %108 = arith.subf %107, %106 : vector<2x8x32xf32>
    %109 = vector.extract_strided_slice %99 {offsets = [0, 0, 0], sizes = [2, 8, 32], strides = [1, 1, 1]} : vector<2x8x64xf32> to vector<2x8x32xf32>
    %110 = tpu.concatenate %108, %109 in 2 : vector<2x8x32xf32>, vector<2x8x32xf32> -> vector<2x8x64xf32>
    %111 = vector.broadcast %53 : vector<1x8x64xf32> to vector<2x8x64xf32>
    %112 = arith.mulf %110, %111 : vector<2x8x64xf32>
    %113 = arith.addf %105, %112 : vector<2x8x64xf32>
    %114 = vector.broadcast %55 : vector<1x8x64xf32> to vector<2x8x64xf32>
    %115 = arith.mulf %101, %114 : vector<2x8x64xf32>
    %116 = vector.extract_strided_slice %101 {offsets = [0, 0, 32], sizes = [2, 8, 32], strides = [1, 1, 1]} : vector<2x8x64xf32> to vector<2x8x32xf32>
    %cst_49 = arith.constant 0.000000e+00 : f32
    %117 = vector.broadcast %cst_49 : f32 to vector<2x8x32xf32>
    %118 = arith.subf %117, %116 : vector<2x8x32xf32>
    %119 = vector.extract_strided_slice %101 {offsets = [0, 0, 0], sizes = [2, 8, 32], strides = [1, 1, 1]} : vector<2x8x64xf32> to vector<2x8x32xf32>
    %120 = tpu.concatenate %118, %119 in 2 : vector<2x8x32xf32>, vector<2x8x32xf32> -> vector<2x8x64xf32>
    %121 = vector.broadcast %53 : vector<1x8x64xf32> to vector<2x8x64xf32>
    %122 = arith.mulf %120, %121 : vector<2x8x64xf32>
    %123 = arith.addf %115, %122 : vector<2x8x64xf32>
    "tpu.trace_start"() <{level = 10 : i32, message = "bqd,bkd->bqk"}> : () -> ()
    %cst_50 = arith.constant dense<0.000000e+00> : vector<2x8x8xf32>
    %124 = tpu.matmul %113, %123, %cst_50 {dimension_numbers = #tpu.dot_dimension_numbers<[2], [2], [1], [1], [0, 0, 0, 1, 1, 1], [0], [0]>} : vector<2x8x64xf32>, vector<2x8x64xf32>, vector<2x8x8xf32> -> vector<2x8x8xf32>
    "tpu.trace_stop"() : () -> ()
    %cst_51 = arith.constant 1.250000e-01 : f32
    %125 = vector.broadcast %cst_51 : f32 to vector<2x8x8xf32>
    %126 = arith.mulf %124, %125 : vector<2x8x8xf32>
    %127 = vector.broadcast %56 : vector<2x1x8xf32> to vector<2x8x8xf32>
    %128 = arith.addf %126, %127 : vector<2x8x8xf32>
    %cst_52 = arith.constant dense<0xFF800000> : vector<2x8xf32>
    %129 = vector.multi_reduction <maximumf>, %128, %cst_52 [2] : vector<2x8x8xf32> to vector<2x8xf32>
    %130 = vector.shape_cast %129 : vector<2x8xf32> to vector<2x8x1xf32>
    %131 = vector.broadcast %130 : vector<2x8x1xf32> to vector<2x8x8xf32>
    %132 = arith.subf %128, %131 : vector<2x8x8xf32>
    %133 = math.exp %132 : vector<2x8x8xf32>
    %cst_53 = arith.constant dense<0.000000e+00> : vector<2x8xf32>
    %134 = vector.multi_reduction <add>, %133, %cst_53 [2] : vector<2x8x8xf32> to vector<2x8xf32>
    %135 = vector.shape_cast %134 : vector<2x8xf32> to vector<2x8x1xf32>
    %136 = vector.broadcast %135 : vector<2x8x1xf32> to vector<2x8x8xf32>
    %137 = arith.divf %133, %136 : vector<2x8x8xf32>
    "tpu.trace_start"() <{level = 10 : i32, message = "bqk,bkd->bqd"}> : () -> ()
    %cst_54 = arith.constant dense<0.000000e+00> : vector<2x8x64xf32>
    %138 = tpu.matmul %137, %103, %cst_54 {dimension_numbers = #tpu.dot_dimension_numbers<[2], [1], [1], [2], [0, 0, 0, 1, 1, 2], [0], [0]>} : vector<2x8x8xf32>, vector<2x8x64xf32>, vector<2x8x64xf32> -> vector<2x8x64xf32>
    "tpu.trace_stop"() : () -> ()
    %139 = tpu.concatenate %97, %138 in 2 : vector<2x8x64xf32>, vector<2x8x64xf32> -> vector<2x8x128xf32>
    %140 = vector.shape_cast %139 : vector<2x8x128xf32> to vector<16x128xf32>
    %c0_55 = arith.constant 0 : index
    %c0_56 = arith.constant 0 : index
    %c0_57 = arith.constant 0 : index
    %141 = vector.load %arg16[%c0_55, %c0_56, %c0_57] : memref<1x128x128xf32, #tpu.memory_space<vmem>>, vector<1x128x128xf32>
    %142 = vector.shape_cast %141 : vector<1x128x128xf32> to vector<128x128xf32>
    %cst_58 = arith.constant dense<0.000000e+00> : vector<16x128xf32>
    %143 = tpu.matmul %140, %142, %cst_58 {dimension_numbers = #tpu.dot_dimension_numbers<[1], [1], [0], [0], [0, 0, 1, 0], [], []>} : vector<16x128xf32>, vector<128x128xf32>, vector<16x128xf32> -> vector<16x128xf32>
    %c0_59 = arith.constant 0 : index
    %c0_60 = arith.constant 0 : index
    %c0_61 = arith.constant 0 : index
    %144 = vector.load %arg17[%c0_59, %c0_60, %c0_61] : memref<1x1x128xf32, #tpu.memory_space<vmem>>, vector<1x1x128xf32>
    %145 = vector.shape_cast %144 : vector<1x1x128xf32> to vector<1x128xf32>
    %146 = vector.broadcast %145 : vector<1x128xf32> to vector<16x128xf32>
    %147 = arith.addf %143, %146 : vector<16x128xf32>
    %148 = vector.shape_cast %147 : vector<16x128xf32> to vector<2x8x128xf32>
    %149 = arith.addf %3, %148 : vector<2x8x128xf32>
    %c0_62 = arith.constant 0 : index
    %c0_63 = arith.constant 0 : index
    %c0_64 = arith.constant 0 : index
    %150 = vector.load %arg18[%c0_62, %c0_63, %c0_64] : memref<1x1x128xf32, #tpu.memory_space<vmem>>, vector<1x1x128xf32>
    %151 = vector.shape_cast %150 : vector<1x1x128xf32> to vector<1x128xf32>
    %c0_65 = arith.constant 0 : index
    %c0_66 = arith.constant 0 : index
    %c0_67 = arith.constant 0 : index
    %152 = vector.load %arg19[%c0_65, %c0_66, %c0_67] : memref<1x1x128xf32, #tpu.memory_space<vmem>>, vector<1x1x128xf32>
    %153 = vector.shape_cast %152 : vector<1x1x128xf32> to vector<1x128xf32>
    %cst_68 = arith.constant dense<0.000000e+00> : vector<2x8xf32>
    %154 = vector.multi_reduction <add>, %149, %cst_68 [2] : vector<2x8x128xf32> to vector<2x8xf32>
    %155 = vector.shape_cast %154 : vector<2x8xf32> to vector<2x8x1xf32>
    %cst_69 = arith.constant 1.280000e+02 : f32
    %156 = vector.broadcast %cst_69 : f32 to vector<2x8x1xf32>
    %157 = arith.divf %155, %156 : vector<2x8x1xf32>
    %158 = vector.broadcast %157 : vector<2x8x1xf32> to vector<2x8x128xf32>
    %159 = arith.subf %149, %158 : vector<2x8x128xf32>
    %160 = arith.mulf %159, %159 : vector<2x8x128xf32>
    %cst_70 = arith.constant dense<0.000000e+00> : vector<2x8xf32>
    %161 = vector.multi_reduction <add>, %160, %cst_70 [2] : vector<2x8x128xf32> to vector<2x8xf32>
    %162 = vector.shape_cast %161 : vector<2x8xf32> to vector<2x8x1xf32>
    %cst_71 = arith.constant 1.280000e+02 : f32
    %163 = vector.broadcast %cst_71 : f32 to vector<2x8x1xf32>
    %164 = arith.divf %162, %163 : vector<2x8x1xf32>
    %cst_72 = arith.constant 9.99999996E-13 : f32
    %165 = vector.broadcast %cst_72 : f32 to vector<2x8x1xf32>
    %166 = arith.addf %164, %165 : vector<2x8x1xf32>
    %167 = math.rsqrt %166 : vector<2x8x1xf32>
    %168 = vector.broadcast %167 : vector<2x8x1xf32> to vector<2x8x128xf32>
    %169 = arith.mulf %159, %168 : vector<2x8x128xf32>
    %170 = vector.shape_cast %151 : vector<1x128xf32> to vector<1x1x128xf32>
    %171 = vector.broadcast %170 : vector<1x1x128xf32> to vector<2x8x128xf32>
    %172 = arith.mulf %169, %171 : vector<2x8x128xf32>
    %173 = vector.shape_cast %153 : vector<1x128xf32> to vector<1x1x128xf32>
    %174 = vector.broadcast %173 : vector<1x1x128xf32> to vector<2x8x128xf32>
    %175 = arith.addf %172, %174 : vector<2x8x128xf32>
    %176 = vector.shape_cast %175 : vector<2x8x128xf32> to vector<16x128xf32>
    %c0_73 = arith.constant 0 : index
    %c0_74 = arith.constant 0 : index
    %c0_75 = arith.constant 0 : index
    %177 = vector.load %arg20[%c0_73, %c0_74, %c0_75] : memref<1x512x128xf32, #tpu.memory_space<vmem>>, vector<1x512x128xf32>
    %178 = vector.shape_cast %177 : vector<1x512x128xf32> to vector<512x128xf32>
    %cst_76 = arith.constant dense<0.000000e+00> : vector<16x512xf32>
    %179 = tpu.matmul %176, %178, %cst_76 {dimension_numbers = #tpu.dot_dimension_numbers<[1], [1], [0], [0], [0, 0, 1, 0], [], []>} : vector<16x128xf32>, vector<512x128xf32>, vector<16x512xf32> -> vector<16x512xf32>
    %c0_77 = arith.constant 0 : index
    %c0_78 = arith.constant 0 : index
    %c0_79 = arith.constant 0 : index
    %180 = vector.load %arg21[%c0_77, %c0_78, %c0_79] : memref<1x1x512xf32, #tpu.memory_space<vmem>>, vector<1x1x512xf32>
    %181 = vector.shape_cast %180 : vector<1x1x512xf32> to vector<1x512xf32>
    %182 = vector.broadcast %181 : vector<1x512xf32> to vector<16x512xf32>
    %183 = arith.addf %179, %182 : vector<16x512xf32>
    %cst_80 = arith.constant 5.000000e-01 : f32
    %184 = vector.broadcast %cst_80 : f32 to vector<16x512xf32>
    %185 = arith.mulf %183, %184 : vector<16x512xf32>
    %186 = arith.mulf %183, %183 : vector<16x512xf32>
    %187 = arith.mulf %186, %183 : vector<16x512xf32>
    %cst_81 = arith.constant 4.471500e-02 : f32
    %188 = vector.broadcast %cst_81 : f32 to vector<16x512xf32>
    %189 = arith.mulf %188, %187 : vector<16x512xf32>
    %190 = arith.addf %183, %189 : vector<16x512xf32>
    %cst_82 = arith.constant 0.797884583 : f32
    %191 = vector.broadcast %cst_82 : f32 to vector<16x512xf32>
    %192 = arith.mulf %191, %190 : vector<16x512xf32>
    %193 = math.tanh %192 : vector<16x512xf32>
    %cst_83 = arith.constant 1.000000e+00 : f32
    %194 = vector.broadcast %cst_83 : f32 to vector<16x512xf32>
    %195 = arith.addf %194, %193 : vector<16x512xf32>
    %196 = arith.mulf %185, %195 : vector<16x512xf32>
    %c0_84 = arith.constant 0 : index
    %c0_85 = arith.constant 0 : index
    %c0_86 = arith.constant 0 : index
    %197 = vector.load %arg22[%c0_84, %c0_85, %c0_86] : memref<1x128x512xf32, #tpu.memory_space<vmem>>, vector<1x128x512xf32>
    %198 = vector.shape_cast %197 : vector<1x128x512xf32> to vector<128x512xf32>
    %cst_87 = arith.constant dense<0.000000e+00> : vector<16x128xf32>
    %199 = tpu.matmul %196, %198, %cst_87 {dimension_numbers = #tpu.dot_dimension_numbers<[1], [1], [0], [0], [0, 0, 1, 0], [], []>} : vector<16x512xf32>, vector<128x512xf32>, vector<16x128xf32> -> vector<16x128xf32>
    %c0_88 = arith.constant 0 : index
    %c0_89 = arith.constant 0 : index
    %c0_90 = arith.constant 0 : index
    %200 = vector.load %arg23[%c0_88, %c0_89, %c0_90] : memref<1x1x128xf32, #tpu.memory_space<vmem>>, vector<1x1x128xf32>
    %201 = vector.shape_cast %200 : vector<1x1x128xf32> to vector<1x128xf32>
    %202 = vector.broadcast %201 : vector<1x128xf32> to vector<16x128xf32>
    %203 = arith.addf %199, %202 : vector<16x128xf32>
    %204 = vector.shape_cast %203 : vector<16x128xf32> to vector<2x8x128xf32>
    %205 = arith.addf %149, %204 : vector<2x8x128xf32>
    %c0_91 = arith.constant 0 : index
    %c0_92 = arith.constant 0 : index
    %c0_93 = arith.constant 0 : index
    %206 = vector.load %arg24[%c0_91, %c0_92, %c0_93] : memref<1x1x128xf32, #tpu.memory_space<vmem>>, vector<1x1x128xf32>
    %207 = vector.shape_cast %206 : vector<1x1x128xf32> to vector<1x128xf32>
    %c0_94 = arith.constant 0 : index
    %c0_95 = arith.constant 0 : index
    %c0_96 = arith.constant 0 : index
    %208 = vector.load %arg25[%c0_94, %c0_95, %c0_96] : memref<1x1x128xf32, #tpu.memory_space<vmem>>, vector<1x1x128xf32>
    %209 = vector.shape_cast %208 : vector<1x1x128xf32> to vector<1x128xf32>
    %cst_97 = arith.constant dense<0.000000e+00> : vector<2x8xf32>
    %210 = vector.multi_reduction <add>, %205, %cst_97 [2] : vector<2x8x128xf32> to vector<2x8xf32>
    %211 = vector.shape_cast %210 : vector<2x8xf32> to vector<2x8x1xf32>
    %cst_98 = arith.constant 1.280000e+02 : f32
    %212 = vector.broadcast %cst_98 : f32 to vector<2x8x1xf32>
    %213 = arith.divf %211, %212 : vector<2x8x1xf32>
    %214 = vector.broadcast %213 : vector<2x8x1xf32> to vector<2x8x128xf32>
    %215 = arith.subf %205, %214 : vector<2x8x128xf32>
    %216 = arith.mulf %215, %215 : vector<2x8x128xf32>
    %cst_99 = arith.constant dense<0.000000e+00> : vector<2x8xf32>
    %217 = vector.multi_reduction <add>, %216, %cst_99 [2] : vector<2x8x128xf32> to vector<2x8xf32>
    %218 = vector.shape_cast %217 : vector<2x8xf32> to vector<2x8x1xf32>
    %cst_100 = arith.constant 1.280000e+02 : f32
    %219 = vector.broadcast %cst_100 : f32 to vector<2x8x1xf32>
    %220 = arith.divf %218, %219 : vector<2x8x1xf32>
    %cst_101 = arith.constant 9.99999996E-13 : f32
    %221 = vector.broadcast %cst_101 : f32 to vector<2x8x1xf32>
    %222 = arith.addf %220, %221 : vector<2x8x1xf32>
    %223 = math.rsqrt %222 : vector<2x8x1xf32>
    %224 = vector.broadcast %223 : vector<2x8x1xf32> to vector<2x8x128xf32>
    %225 = arith.mulf %215, %224 : vector<2x8x128xf32>
    %226 = vector.shape_cast %207 : vector<1x128xf32> to vector<1x1x128xf32>
    %227 = vector.broadcast %226 : vector<1x1x128xf32> to vector<2x8x128xf32>
    %228 = arith.mulf %225, %227 : vector<2x8x128xf32>
    %229 = vector.shape_cast %209 : vector<1x128xf32> to vector<1x1x128xf32>
    %230 = vector.broadcast %229 : vector<1x1x128xf32> to vector<2x8x128xf32>
    %231 = arith.addf %228, %230 : vector<2x8x128xf32>
    %c0_102 = arith.constant 0 : index
    %c0_103 = arith.constant 0 : index
    %c0_104 = arith.constant 0 : index
    %232 = vector.load %arg26[%c0_102, %c0_103, %c0_104] : memref<2x8x128xf32, #tpu.memory_space<vmem>>, vector<2x8x128xf32>
    tpu.vector_store %arg26[%c0_102, %c0_103, %c0_104], %231 {strides = array<i32>} : memref<2x8x128xf32, #tpu.memory_space<vmem>>, vector<2x8x128xf32>,
    return
  }
  func.func @transform_0(%arg0: i32, %arg1: i32) -> (i32, i32, i32) {
    %c0_i32 = arith.constant 0 : i32
    %c0_i32_0 = arith.constant 0 : i32
    %c0_i32_1 = arith.constant 0 : i32
    return %arg0, %c0_i32, %c0_i32_0 : i32, i32, i32
  }
  func.func @transform_1(%arg0: i32, %arg1: i32) -> (i32, i32, i32) {
    %c0_i32 = arith.constant 0 : i32
    %c0_i32_0 = arith.constant 0 : i32
    %c0_i32_1 = arith.constant 0 : i32
    return %arg0, %c0_i32, %c0_i32_0 : i32, i32, i32
  }
  func.func @transform_2(%arg0: i32, %arg1: i32) -> (i32, i32) {
    %c0_i32 = arith.constant 0 : i32
    %c0_i32_0 = arith.constant 0 : i32
    %c0_i32_1 = arith.constant 0 : i32
    return %c0_i32, %c0_i32_0 : i32, i32
  }
  func.func @transform_3(%arg0: i32, %arg1: i32) -> (i32, i32) {
    %c0_i32 = arith.constant 0 : i32
    %c0_i32_0 = arith.constant 0 : i32
    %c0_i32_1 = arith.constant 0 : i32
    return %c0_i32, %c0_i32_0 : i32, i32
  }
  func.func @transform_4(%arg0: i32, %arg1: i32) -> (i32, i32) {
    %c0_i32 = arith.constant 0 : i32
    %c0_i32_0 = arith.constant 0 : i32
    %c0_i32_1 = arith.constant 0 : i32
    return %c0_i32, %c0_i32_0 : i32, i32
  }
  func.func @transform_5(%arg0: i32, %arg1: i32) -> (i32, i32) {
    %c0_i32 = arith.constant 0 : i32
    %c0_i32_0 = arith.constant 0 : i32
    %c0_i32_1 = arith.constant 0 : i32
    return %c0_i32, %c0_i32_0 : i32, i32
  }
  func.func @transform_6(%arg0: i32, %arg1: i32) -> (i32, i32, i32) {
    %c0_i32 = arith.constant 0 : i32
    %c0_i32_0 = arith.constant 0 : i32
    %c0_i32_1 = arith.constant 0 : i32
    return %arg1, %c0_i32, %c0_i32_0 : i32, i32, i32
  }
  func.func @transform_7(%arg0: i32, %arg1: i32) -> (i32, i32, i32) {
    %c0_i32 = arith.constant 0 : i32
    %c0_i32_0 = arith.constant 0 : i32
    %c0_i32_1 = arith.constant 0 : i32
    return %arg1, %c0_i32, %c0_i32_0 : i32, i32, i32
  }
  func.func @transform_8(%arg0: i32, %arg1: i32) -> (i32, i32, i32) {
    %c0_i32 = arith.constant 0 : i32
    %c0_i32_0 = arith.constant 0 : i32
    %c0_i32_1 = arith.constant 0 : i32
    return %arg1, %c0_i32, %c0_i32_0 : i32, i32, i32
  }
  func.func @transform_9(%arg0: i32, %arg1: i32) -> (i32, i32, i32) {
    %c0_i32 = arith.constant 0 : i32
    %c0_i32_0 = arith.constant 0 : i32
    %c0_i32_1 = arith.constant 0 : i32
    return %arg1, %c0_i32, %c0_i32_0 : i32, i32, i32
  }
  func.func @transform_10(%arg0: i32, %arg1: i32) -> (i32, i32, i32) {
    %c0_i32 = arith.constant 0 : i32
    %c0_i32_0 = arith.constant 0 : i32
    %c0_i32_1 = arith.constant 0 : i32
    return %arg1, %c0_i32, %c0_i32_0 : i32, i32, i32
  }
  func.func @transform_11(%arg0: i32, %arg1: i32) -> (i32, i32, i32) {
    %c0_i32 = arith.constant 0 : i32
    %c0_i32_0 = arith.constant 0 : i32
    %c0_i32_1 = arith.constant 0 : i32
    return %arg1, %c0_i32, %c0_i32_0 : i32, i32, i32
  }
  func.func @transform_12(%arg0: i32, %arg1: i32) -> (i32, i32, i32) {
    %c0_i32 = arith.constant 0 : i32
    %c0_i32_0 = arith.constant 0 : i32
    %c0_i32_1 = arith.constant 0 : i32
    return %arg1, %c0_i32, %c0_i32_0 : i32, i32, i32
  }
  func.func @transform_13(%arg0: i32, %arg1: i32) -> (i32, i32, i32) {
    %c0_i32 = arith.constant 0 : i32
    %c0_i32_0 = arith.constant 0 : i32
    %c0_i32_1 = arith.constant 0 : i32
    return %arg1, %c0_i32, %c0_i32_0 : i32, i32, i32
  }
  func.func @transform_14(%arg0: i32, %arg1: i32) -> (i32, i32, i32) {
    %c0_i32 = arith.constant 0 : i32
    %c0_i32_0 = arith.constant 0 : i32
    %c0_i32_1 = arith.constant 0 : i32
    return %arg1, %c0_i32, %c0_i32_0 : i32, i32, i32
  }
  func.func @transform_15(%arg0: i32, %arg1: i32) -> (i32, i32, i32) {
    %c0_i32 = arith.constant 0 : i32
    %c0_i32_0 = arith.constant 0 : i32
    %c0_i32_1 = arith.constant 0 : i32
    return %arg1, %c0_i32, %c0_i32_0 : i32, i32, i32
  }
  func.func @transform_16(%arg0: i32, %arg1: i32) -> (i32, i32, i32) {
    %c0_i32 = arith.constant 0 : i32
    %c0_i32_0 = arith.constant 0 : i32
    %c0_i32_1 = arith.constant 0 : i32
    return %arg1, %c0_i32, %c0_i32_0 : i32, i32, i32
  }
  func.func @transform_17(%arg0: i32, %arg1: i32) -> (i32, i32, i32) {
    %c0_i32 = arith.constant 0 : i32
    %c0_i32_0 = arith.constant 0 : i32
    %c0_i32_1 = arith.constant 0 : i32
    return %arg1, %c0_i32, %c0_i32_0 : i32, i32, i32
  }
  func.func @transform_18(%arg0: i32, %arg1: i32) -> (i32, i32, i32) {
    %c0_i32 = arith.constant 0 : i32
    %c0_i32_0 = arith.constant 0 : i32
    %c0_i32_1 = arith.constant 0 : i32
    return %arg1, %c0_i32, %c0_i32_0 : i32, i32, i32
  }
  func.func @transform_19(%arg0: i32, %arg1: i32) -> (i32, i32, i32) {
    %c0_i32 = arith.constant 0 : i32
    %c0_i32_0 = arith.constant 0 : i32
    %c0_i32_1 = arith.constant 0 : i32
    return %arg1, %c0_i32, %c0_i32_0 : i32, i32, i32
  }
  func.func @transform_20(%arg0: i32, %arg1: i32) -> (i32, i32, i32) {
    %c0_i32 = arith.constant 0 : i32
    %c0_i32_0 = arith.constant 0 : i32
    %c0_i32_1 = arith.constant 0 : i32
    return %arg1, %c0_i32, %c0_i32_0 : i32, i32, i32
  }
  func.func @transform_21(%arg0: i32, %arg1: i32) -> (i32, i32, i32) {
    %c0_i32 = arith.constant 0 : i32
    %c0_i32_0 = arith.constant 0 : i32
    %c0_i32_1 = arith.constant 0 : i32
    return %arg1, %c0_i32, %c0_i32_0 : i32, i32, i32
  }
  func.func @transform_22(%arg0: i32, %arg1: i32) -> (i32, i32, i32) {
    %c0_i32 = arith.constant 0 : i32
    %c0_i32_0 = arith.constant 0 : i32
    %c0_i32_1 = arith.constant 0 : i32
    return %arg1, %c0_i32, %c0_i32_0 : i32, i32, i32
  }
  func.func @transform_23(%arg0: i32, %arg1: i32) -> (i32, i32, i32) {
    %c0_i32 = arith.constant 0 : i32
    %c0_i32_0 = arith.constant 0 : i32
    %c0_i32_1 = arith.constant 0 : i32
    return %arg1, %c0_i32, %c0_i32_0 : i32, i32, i32
  }
  func.func @transform_24(%arg0: i32, %arg1: i32) -> (i32, i32, i32) {
    %c0_i32 = arith.constant 0 : i32
    %c0_i32_0 = arith.constant 0 : i32
    %c0_i32_1 = arith.constant 0 : i32
    return %arg0, %c0_i32, %c0_i32_0 : i32, i32, i32
  }
}

</mosaic_0001>

<bundles_post_ra>
// kernel: tpu_custom_call.1
= control target key start
LH: loop header
LB: loop body
LE: loop exit
PB: predicated region body
PF: predicated region fallthrough
CT: control target
= control target key end

     0   :  { %s4732_s0 = inlined_call_operand.hbm [shape: f32[2,8,128], index: 0, kind: input, shape index: {}]   ;;  %s4733_s1 = inlined_call_operand.hbm [shape: f32[2,1,8], index: 1, kind: input, shape index: {}]   ;;  %s4734_s2 = inlined_call_operand.hbm [shape: f32[8,64], index: 2, kind: input, shape index: {}]   ;;  %s4735_s3 = inlined_call_operand.hbm [shape: f32[8,64], index: 3, kind: input, shape index: {}]   ;;  %s4736_s4 = inlined_call_operand.hbm [shape: f32[1,128], index: 4, kind: input, shape index: {}]   ;;  %s4737_s5 = inlined_call_operand.hbm [shape: f32[1,128], index: 5, kind: input, shape index: {}]   ;;  %s4738_s6 = inlined_call_operand.vmem [shape: f32[2,1,128], index: 6, kind: input, shape index: {}]   ;;  %s4739_s7 = inlined_call_operand.vmem [shape: f32[2,1,128], index: 7, kind: input, shape index: {}]   ;;  %s4740_s8 = inlined_call_operand.hbm [shape: f32[2,128,128], index: 8, kind: input, shape index: {}]   ;;  %s4741_s9 = inlined_call_operand.vmem [shape: f32[2,1,128], index: 9, kind: input, shape index: {}]   ;;  %s4742_s10 = inlined_call_operand.hbm [shape: f32[2,128,128], index: 10, kind: input, shape index: {}]   ;;  %s4743_s11 = inlined_call_operand.vmem [shape: f32[2,1,128], index: 11, kind: input, shape index: {}]   ;;  %s4744_s12 = inlined_call_operand.hbm [shape: f32[2,128,128], index: 12, kind: input, shape index: {}]   ;;  %s4745_s13 = inlined_call_operand.hbm [shape: f32[2,1,128], index: 13, kind: input, shape index: {}]   ;;  %s4746_s14 = inlined_call_operand.hbm [shape: f32[2,128,128], index: 14, kind: input, shape index: {}]   ;;  %s4747_s15 = inlined_call_operand.hbm [shape: f32[2,1,128], index: 15, kind: input, shape index: {}]   ;;  %s4748_s16 = inlined_call_operand.hbm [shape: f32[2,1,128], index: 16, kind: input, shape index: {}]   ;;  %s4749_s17 = inlined_call_operand.hbm [shape: f32[2,1,128], index: 17, kind: input, shape index: {}]   ;;  %s4750_s18 = inlined_call_operand.hbm [shape: f32[2,512,128], index: 18, kind: input, shape index: {}]   ;;  %s4751_s19 = inlined_call_operand.vmem [shape: f32[2,1,512], index: 19, kind: input, shape index: {}]   ;;  %s4752_s20 = inlined_call_operand.hbm [shape: f32[2,128,512], index: 20, kind: input, shape index: {}]   ;;  %s4753_s21 = inlined_call_operand.vmem [shape: f32[2,1,128], index: 21, kind: input, shape index: {}]   ;;  %s4754_s22 = inlined_call_operand.vmem [shape: f32[2,1,128], index: 22, kind: input, shape index: {}]   ;;  %s4755_s23 = inlined_call_operand.vmem [shape: f32[2,1,128], index: 23, kind: input, shape index: {}]   ;;  %s4756_s24 = inlined_call_operand.hbm [shape: f32[2,8,128], index: 24, kind: output, shape index: {}]  }
   0x1   :  { %4766 = sst [smem:[#allocation35_spill]] %s4732_s0 }
   0x2   :  { %4767 = sst [smem:[#allocation36_spill]] %s4733_s1 }
   0x3   :  { %4768 = sst [smem:[#allocation37_spill]] %s4734_s2 }
   0x4   :  { %4769 = sst [smem:[#allocation38_spill]] %s4735_s3 }
   0x5   :  { %4770 = sst [smem:[#allocation39_spill]] %s4736_s4 }
   0x6   :  { %4771 = sst [smem:[#allocation40_spill]] %s4737_s5 }
   0x7   :  { %4772 = sst [smem:[#allocation41_spill]] %s4738_s6 }
   0x8   :  { %4773 = sst [smem:[#allocation42_spill]] %s4739_s7 }
   0x9   :  { %4774 = sst [smem:[#allocation43_spill]] %s4740_s8 }
   0xa   :  { %4775 = sst [smem:[#allocation44_spill]] %s4741_s9 }
   0xb   :  { %4776 = sst [smem:[#allocation45_spill]] %s4742_s10 }
   0xc   :  { %4777 = sst [smem:[#allocation46_spill]] %s4743_s11 }
   0xd   :  { %4778 = sst [smem:[#allocation47_spill]] %s4744_s12 }
   0xe   :  { %4779 = sst [smem:[#allocation48_spill]] %s4745_s13 }
   0xf   :  { %4780 = sst [smem:[#allocation49_spill]] %s4746_s14 }
  0x10   :  { %4781 = sst [smem:[#allocation50_spill]] %s4747_s15 }
  0x11   :  { %4782 = sst [smem:[#allocation51_spill]] %s4748_s16 }
  0x12   :  { %4783 = sst [smem:[#allocation52_spill]] %s4749_s17 }
  0x13   :  { %4784 = sst [smem:[#allocation53_spill]] %s4750_s18 }
  0x14   :  { %4785 = sst [smem:[#allocation54_spill]] %s4751_s19 }
  0x15   :  { %4786 = sst [smem:[#allocation55_spill]] %s4753_s21 }
  0x16   :  { %4787 = sst [smem:[#allocation56_spill]] %s4754_s22 }
  0x17   :  { %4788 = sst [smem:[#allocation57_spill]] %s4755_s23 }
  0x18   :  { %4789 = sst [smem:[#allocation58_spill]] %s4756_s24 }
  0x19   :  { %29 = vsyncpa [#allocation3], 0 }
  0x1a   :  { %30 = vsyncpa [#allocation6], 0 }
  0x1b   :  { %31 = vsyncpa [#allocation9], 0 }
  0x1c   :  { %32 = vsyncpa [#allocation12], 0 }
  0x1d   :  { %33 = vsyncpa [#allocation4], 0  ;;  %s3979_s5 = smov 0   ;;  %s3981_s26 = smov 0  }
  0x1e   :  { %s3983_s27 = smov 0   ;;  %s3985_s28 = smov 0  }
  0x1f   :  { %s3987_s6 = smov 0   ;;  %s3989_s2 = smov 0  }
  0x20 LB: > { %4790 = sst [smem:[#allocation30_spill]] %s3820_s27  ;;  %s4008_s29 = sadd.s32 4294967295, %s3832_s2   ;;  %s3832_s2 = sphi %s3989_s2, %s39_s2   ;;  %s3828_s6 = sphi %s3987_s6, %s4846_s6   ;;  %s3824_s28 = sphi %s3985_s28, %s4845_s28   ;;  %s3820_s27 = sphi %s3983_s27, %s4844_s27   ;;  %s3816_s26 = sphi %s3981_s26, %s4843_s26   ;;  %s3812_s5 = sphi %s3979_s5, %s4842_s5  }
  0x21   : > { %4791 = sst [smem:[#allocation31_spill]] %s3824_s28  ;;  %p259_p0 = scmp.ne.s32.totalorder %s3816_s26, %s3812_s5 }
  0x22   : > { %4792 = sst [smem:[#allocation32_spill]] %s3832_s2  ;;  %p260_p1 = scmp.eq.s32.totalorder %s4008_s29, 0 }
  0x23   : > { %p2943_p2 = scmp.ge.s32.totalorder %s3832_s2, 1  ;;  %p686_p3 = scmp.lt.s32.totalorder %s3832_s2, 3 }
  0x24   : > { %p4016_p4 = por %p260_p1, %p259_p0  ;;  %s4794_s3 = sld [smem:[#allocation35_spill]] }
  0x25   : > { %p4023_p5 = pnand %p2943_p2, %p686_p3  ;;  %s3834_s4 = smov [#allocation2]  }
  0x26   : > { %s702_s1 = sshll.u32 %s3834_s4, 4  ;;  %s4757_s7 = smov 128   ;;  %s703_s1 = int_to_ptr.vmem [resolvable:$true] %s702_s1 }
  0x27   : > { %p3054_p6 = pneg %p4023_p5  ;;  %s4759_s30 = smov 8  }
  0x28   : > { %s246_s4 = sadd.s32 1, %s3820_s27  ;;  %p253_p9 = scmp.ne.s32.totalorder %s3820_s27, %s3816_s26 }
  0x29   : > { %p4031_p7 = pnand %p3054_p6, %p260_p1  ;;  %p254_p10 = scmp.eq.s32.totalorder %s3832_s2, 0 }
  0x2a   : > { %s700_s25 = sshll.u32 %s4794_s3, 4  ;;  %s48_s3 = sadd.s32 1, %s3828_s6  ;;  %s701_s25 = int_to_ptr.hbm [resolvable:$true] %s700_s25 }
  0x2b   : > { %3057 = dma.hbm_to_vmem [thread:$0]  (!%p4031_p7), %s701_s25, 256, %s703_s1, [#allocation3], %s4757_s7, %s4757_s7, %s4759_s30  }
  0x2c   : > { %p49_p8 = scmp.ge.s32.totalorder %s48_s3, 2  ;;  %p4047_p11 = por %p254_p10, %p253_p9 }
  0x2d   : > { %p3110_p12 = scmp.lt.s32.totalorder %s3832_s2, 2  ;;  %s792_s22 = sand.u32 1, %s3832_s2  }
  0x2e   : > { %s4848_s3 = smov (%p49_p8, %s48_s3), 0  ;;  %s4056_s19 = sand.u32 1, %s3820_s27  }
  0x2f   : > { %4797 = sst [smem:[#allocation33_spill]] %s4848_s3  ;;  %s243_s23 = ssub.s32 %s3828_s6, %s4848_s3 }
  0x30   : > { %p244_p13 = scmp.eq.s32.totalorder %s243_s23, 0  ;;  %s4059_s25 = sshll.u32 %s3828_s6, 7 }
  0x31   : > { %s4065_s7 = sshll.u32 %s4056_s19, 7  ;;  %s4800_s11 = sld [smem:[#allocation43_spill]] }
  0x32   : > { %s4062_s1 = scalar_select %p244_p13, %s3820_s27, %s246_s4  }
  0x33   : > { %s796_s23 = scalar_lea.vmem [#allocation13], %s4065_s7  ;;  %p4076_p0 = pnand %p3110_p12, %p4047_p11 }
  0x34   : > { %4799 = sst [smem:[#allocation34_spill]] %s4062_s1  ;;  %s804_s28 = sshll.u32 %s796_s23, 4  ;;  %s805_s28 = int_to_ptr.vmem [resolvable:$true] %s804_s28 }
  0x35   : > { %s4802_s10 = sld [smem:[#allocation45_spill]]  ;;  %s4084_s21 = scalar_lea.sflag [#allocation3], %s792_s22 }
  0x36   : > { %s4803_s30 = smov 8   ;;  %s4804_s24 = smov 128  }
  0x37   : > { %s801_s9 = scalar_lea.hbm %s4800_s11, %s4059_s25  ;;  %s824_s23 = scalar_lea.vmem [#allocation14], %s4065_s7 }
  0x38   : > { %s802_s3 = sshll.u32 %s801_s9, 4  ;;  %s832_s27 = sshll.u32 %s824_s23, 4  ;;  %s803_s3 = int_to_ptr.hbm [resolvable:$true] %s802_s3  ;;  %s833_s27 = int_to_ptr.vmem [resolvable:$true] %s832_s27 }
  0x39   : > { %3076 = dma.hbm_to_vmem [thread:$0]  (!%p4076_p0), %s803_s3, 2048, %s805_s28, %s4084_s21, %s4804_s24, %s4804_s24, %s4803_s30  }
  0x3a   : > { %s4805_s12 = sld [smem:[#allocation47_spill]] }
  0x3b   : > { %s829_s11 = scalar_lea.hbm %s4802_s10, %s4059_s25  ;;  %s852_s10 = scalar_lea.vmem [#allocation15], %s4065_s7 }
  0x3c   : > { %s830_s9 = sshll.u32 %s829_s11, 4  ;;  %s860_s2 = sshll.u32 %s852_s10, 4  ;;  %s831_s9 = int_to_ptr.hbm [resolvable:$true] %s830_s9  ;;  %s861_s2 = int_to_ptr.vmem [resolvable:$true] %s860_s2 }
  0x3d   : > { %3079 = dma.hbm_to_vmem [thread:$0]  (!%p4076_p0), %s831_s9, 2048, %s833_s27, %s4084_s21, %s4804_s24, %s4804_s24, %s4803_s30  }
  0x3e   : > { %s4806_s13 = sld [smem:[#allocation48_spill]]  ;;  %s873_s27 = scalar_lea.vmem [#allocation16], %s4056_s19 }
  0x3f   : > { %s880_s22 = sshll.u32 %s873_s27, 4  ;;  %s4807_s14 = sld [smem:[#allocation49_spill]]  ;;  %s881_s22 = int_to_ptr.vmem [resolvable:$true] %s880_s22 }
  0x40   : > { %s857_s11 = scalar_lea.hbm %s4805_s12, %s4059_s25  ;;  %s4808_s15 = sld [smem:[#allocation50_spill]] }
  0x41   : > { %s858_s28 = sshll.u32 %s857_s11, 4  ;;  %s4809_s16 = sld [smem:[#allocation51_spill]]  ;;  %s859_s28 = int_to_ptr.hbm [resolvable:$true] %s858_s28 }
  0x42   : > { %3082 = dma.hbm_to_vmem [thread:$0]  (!%p4076_p0), %s859_s28, 2048, %s861_s2, %s4084_s21, %s4804_s24, %s4804_s24, %s4803_s30  }
  0x43   : > { %s891_s28 = scalar_lea.vmem [#allocation17], %s4065_s7  ;;  %s4810_s17 = sld [smem:[#allocation52_spill]] }
  0x44   : > { %s876_s23 = scalar_lea.hbm %s4806_s13, %s3828_s6  ;;  %s899_s12 = sshll.u32 %s891_s28, 4  ;;  %s900_s12 = int_to_ptr.vmem [resolvable:$true] %s899_s12 }
  0x45   : > { %s878_s1 = sshll.u32 %s876_s23, 4  ;;  %s896_s2 = scalar_lea.hbm %s4807_s14, %s4059_s25  ;;  %s879_s1 = int_to_ptr.hbm [resolvable:$true] %s878_s1 }
  0x46   : > { %3085 = dma.hbm_to_vmem [thread:$0]  (!%p4076_p0), %s879_s1, 16, %s881_s22, %s4084_s21  }
  0x47   : > { %s897_s3 = sshll.u32 %s896_s2, 4  ;;  %s915_s27 = scalar_lea.hbm %s4808_s15, %s3828_s6  ;;  %s898_s3 = int_to_ptr.hbm [resolvable:$true] %s897_s3 }
  0x48   : > { %3088 = dma.hbm_to_vmem [thread:$0]  (!%p4076_p0), %s898_s3, 2048, %s900_s12, %s4084_s21, %s4804_s24, %s4804_s24, %s4803_s30  }
  0x49   : > { %s912_s22 = scalar_lea.vmem [#allocation18], %s4056_s19  ;;  %s917_s7 = sshll.u32 %s915_s27, 4  ;;  %s918_s7 = int_to_ptr.hbm [resolvable:$true] %s917_s7 }
  0x4a   : > { %s919_s25 = sshll.u32 %s912_s22, 4  ;;  %s932_s11 = scalar_lea.hbm %s4809_s16, %s3828_s6  ;;  %s920_s25 = int_to_ptr.vmem [resolvable:$true] %s919_s25 }
  0x4b   : > { %3091 = dma.hbm_to_vmem [thread:$0]  (!%p4076_p0), %s918_s7, 16, %s920_s25, %s4084_s21  }
  0x4c   : > { %s929_s2 = scalar_lea.vmem [#allocation19], %s4056_s19  ;;  %s934_s28 = sshll.u32 %s932_s11, 4  ;;  %s935_s28 = int_to_ptr.hbm [resolvable:$true] %s934_s28 }
  0x4d   : > { %s936_s12 = sshll.u32 %s929_s2, 4  ;;  %s949_s23 = scalar_lea.hbm %s4810_s17, %s3828_s6  ;;  %s937_s12 = int_to_ptr.vmem [resolvable:$true] %s936_s12 }
  0x4e   : > { %3094 = dma.hbm_to_vmem [thread:$0]  (!%p4076_p0), %s935_s28, 16, %s937_s12, %s4084_s21  }
  0x4f   : > { %s946_s27 = scalar_lea.vmem [#allocation20], %s4056_s19  ;;  %s951_s13 = sshll.u32 %s949_s23, 4  ;;  %s952_s13 = int_to_ptr.hbm [resolvable:$true] %s951_s13 }
  0x50   : > { %s953_s22 = sshll.u32 %s946_s27, 4  ;;  %s4811_s1 = sld [smem:[#allocation36_spill]]  ;;  %s954_s22 = int_to_ptr.vmem [resolvable:$true] %s953_s22 }
  0x51   : > { %3097 = dma.hbm_to_vmem [thread:$0]  (!%p4076_p0), %s952_s13, 16, %s954_s22, %s4084_s21  }
  0x52   : > { %s3837_s11 = smov [#allocation5]   ;;  %s3838_s12 = smov 16  }
  0x53   : > { %s718_s2 = sshll.u32 %s3837_s11, 4  ;;  %s3839_s28 = smov 1   ;;  %s719_s2 = int_to_ptr.vmem [resolvable:$true] %s718_s2 }
  0x54   : > { %s4812_s23 = sld [smem:[#allocation38_spill]]  ;;  %s3840_s25 = smov [#allocation8]  }
  0x55   : > { %s745_s7 = sshll.u32 %s3840_s25, 4  ;;  %s4765_s13 = sshll.u32 %s4056_s19, 9  ;;  %s746_s7 = int_to_ptr.vmem [resolvable:$true] %s745_s7 }
  0x56   : > { %s716_s10 = sshll.u32 %s4811_s1, 4  ;;  %s3004_s22 = sshll.u32 %s3828_s6, 9  ;;  %s717_s10 = int_to_ptr.hbm [resolvable:$true] %s716_s10 }
  0x57   : > { %3060 = dma.hbm_to_vmem [thread:$0]  (!%p4031_p7), %s717_s10, 32, %s719_s2, [#allocation6], %s3838_s12, %s3838_s12, %s3839_s28  }
  0x58   : > { %s4813_s18 = sld [smem:[#allocation53_spill]]  ;;  %s964_s10 = scalar_lea.vmem [#allocation21], %s4765_s13 }
  0x59   : > { %s972_s2 = sshll.u32 %s964_s10, 4  ;;  %s4814_s9 = sld [smem:[#allocation37_spill]]  ;;  %s973_s2 = int_to_ptr.vmem [resolvable:$true] %s972_s2 }
  0x5a   : > { %s743_s27 = sshll.u32 %s4812_s23, 4  ;;  %s4815_s11 = sld [smem:[#allocation39_spill]]  ;;  %s744_s27 = int_to_ptr.hbm [resolvable:$true] %s743_s27 }
  0x5b   : > { %3066 = dma.hbm_to_vmem [thread:$0]  (!%p4031_p7), %s744_s27, 128, %s746_s7, [#allocation9]  }
  0x5c   : > { %s3841_s27 = smov [#allocation7]   ;;  %s4816_s3 = sld [smem:[#allocation40_spill]] }
  0x5d   : > { %s733_s25 = sshll.u32 %s3841_s27, 4  ;;  %s3842_s13 = smov [#allocation10]   ;;  %s734_s25 = int_to_ptr.vmem [resolvable:$true] %s733_s25 }
  0x5e   : > { %s969_s14 = scalar_lea.hbm %s4813_s18, %s3004_s22  ;;  %s757_s15 = sshll.u32 %s3842_s13, 4  ;;  %s758_s15 = int_to_ptr.vmem [resolvable:$true] %s757_s15 }
  0x5f   : > { %s970_s12 = sshll.u32 %s969_s14, 4  ;;  %s731_s23 = sshll.u32 %s4814_s9, 4  ;;  %s971_s12 = int_to_ptr.hbm [resolvable:$true] %s970_s12  ;;  %s732_s23 = int_to_ptr.hbm [resolvable:$true] %s731_s23 }
  0x60   : > { %3100 = dma.hbm_to_vmem [thread:$0]  (!%p4076_p0), %s971_s12, 8192, %s973_s2, %s4084_s21, %s4804_s24, %s4804_s24, %s4803_s30  }
  0x61   : > { %s755_s14 = sshll.u32 %s4815_s11, 4  ;;  %s3843_s30 = smov [#allocation11]   ;;  %s756_s14 = int_to_ptr.hbm [resolvable:$true] %s755_s14 }
  0x62   : > { %3063 = dma.hbm_to_vmem [thread:$0]  (!%p4031_p7), %s732_s23, 128, %s734_s25, [#allocation6]  }
  0x63   : > { %s767_s9 = sshll.u32 %s4816_s3, 4  ;;  %s769_s24 = sshll.u32 %s3843_s30, 4  ;;  %s768_s9 = int_to_ptr.hbm [resolvable:$true] %s767_s9  ;;  %s770_s24 = int_to_ptr.vmem [resolvable:$true] %s769_s24 }
  0x64   : > { %3069 = dma.hbm_to_vmem [thread:$0]  (!%p4031_p7), %s756_s14, 16, %s758_s15, [#allocation9]  }
  0x65   : > { %s998_s27 = scalar_lea.hbm %s4752_s20, %s3004_s22  ;;  %s4817_s25 = sshll.u32 %s4056_s19, 9 }
  0x66   : > { %3072 = dma.hbm_to_vmem [thread:$0]  (!%p4031_p7), %s768_s9, 16, %s770_s24, [#allocation12]  }
  0x67   : > { %s999_s23 = sshll.u32 %s998_s27, 4  ;;  %s993_s7 = scalar_lea.vmem [#allocation22], %s4817_s25  ;;  %s1000_s23 = int_to_ptr.hbm [resolvable:$true] %s999_s23 }
  0x68   : > { %s1001_s1 = sshll.u32 %s993_s7, 4  ;;  %s3844_s13 = smov 512   ;;  %s1002_s1 = int_to_ptr.vmem [resolvable:$true] %s1001_s1 }
  0x69   : > { %s3845_s11 = smov 32   ;;  %1031 = sbr.rel (%p4023_p5) target bundleno = 2788 (0xae4), region = 116 }
  0x6a   : > { %3103 = dma.hbm_to_vmem [thread:$0]  (!%p4076_p0), %s1000_s23, 8192, %s1002_s1, %s4084_s21, %s3844_s13, %s3844_s13, %s3845_s11  }
  0x6e   : > { %3787 = dma.done.wait (%p260_p1), [#allocation3], 256  }
  0x6f   : > { %3789 = vsyncadd (%p260_p1), [#allocation3], 4294967040 }
  0x70   : > { %3791 = dma.done.wait (%p260_p1), [#allocation6], 160  }
  0x71   : > { %3793 = vsyncadd (%p260_p1), [#allocation6], 4294967136 }
  0x72   : > { %3795 = dma.done.wait (%p260_p1), [#allocation9], 144  }
  0x73   : > { %3797 = vsyncadd (%p260_p1), [#allocation9], 4294967152 }
  0x74   : > { %3799 = dma.done.wait (%p260_p1), [#allocation12], 16  }
  0x75   : > { %3801 = vsyncadd (%p260_p1), [#allocation12], 4294967280  ;;  %s1063_s15 = sand.u32 1, %s4008_s29   ;;  %s4219_s19 = sand.u32 1, %s3816_s26  }
  0x76   : > { %s2976_s8 = sshll.u32 %s4219_s19, 7  ;;  %s1064_s5 = scalar_lea.sflag [#allocation3], %s1063_s15 }
  0x77   : > { %s4222_s4 = scalar_lea.vmem [#allocation13], %s2976_s8 }
  0x78   : > { %3803 = dma.done.wait (%p4016_p4), %s1064_s5, 24640  }
  0x79   : > { %3805 = vsyncadd (%p4016_p4), %s1064_s5, 4294942656  ;;  %s4818_s21 = sld [smem:[#allocation31_spill]]  ;;  %s2980_s22 = sshll.u32 %s4219_s19, 9 }
  0x7a   : > { %s4822_s13 = sld [smem:[#allocation46_spill]]  ;;  %s4267_s7 = scalar_lea.vmem [#allocation14], %s2976_s8 }
  0x7b   : > { %s4823_s28 = sld [smem:[#allocation55_spill]]  ;;  %s4269_s1 = scalar_lea.vmem [#allocation15], %s2976_s8 }
  0x7c   : > { %s4824_s3 = sld [smem:[#allocation54_spill]]  ;;  %s4272_s5 = scalar_lea.vmem [#allocation17], %s2976_s8 }
  0x7d   : > { %s4825_s24 = sld [smem:[#allocation56_spill]]  ;;  %s1115_s10 = scalar_lea.vmem [#allocation18], %s4219_s19 }
  0x7e   : > { %s4826_s23 = sld [smem:[#allocation57_spill]]  ;;  %s1133_s17 = scalar_lea.vmem [#allocation20], %s4219_s19 }
  0x7f   : > { %p1282_p1 = scmp.lt.s32.totalorder %s4818_s21, 1  ;;  %s4277_s18 = scalar_lea.vmem [#allocation21], %s2980_s22 }
  0x80   : > { %p2983_p2 = scmp.ne.s32.totalorder %s4818_s21, 0 }
  0x81   : > { %s4231_s14 = scalar_select %p1282_p1, %s4818_s21, 1 }
  0x83   : > { %s1293_s11 = scalar_lea.vmem %s4822_s13, %s4231_s14  ;;  %s2982_s15 = sshll.u32 %s4231_s14, 2 }
  0x84   : > { %s1300_s16 = scalar_lea.vmem %s4823_s28, %s4231_s14  ;;  %s4257_s0 = scalar_lea.vmem %s4824_s3, %s2982_s15 }
  0x85   : > { %s1303_s2 = scalar_lea.vmem %s4825_s24, %s4231_s14  ;;  %s1306_s25 = scalar_lea.vmem %s4826_s23, %s4231_s14 }
  0x86   : > { %s1096_s13 = scalar_lea.vmem [#allocation16], %s4219_s19  ;;  %s1124_s28 = scalar_lea.vmem [#allocation19], %s4219_s19 }
  0x87   : > { %s4279_s15 = scalar_lea.vmem [#allocation22], %s2980_s22  ;;  %1311 = sbr.rel (%p2983_p2) target bundleno = 416 (0x1a0), region = 184 }
  0x8c   : > { %v1312_v0 = vld [vmem:[#allocation2] sm:$0xff]  ;;  %v1313_v1 = vld [vmem:[#allocation2 + $0x8] sm:$0xff]  ;;  %v3846_v2 = vmov 128.0  }
  0x8d   : > { %1316 = vadd.xlane.f32.xlu0 %v1312_v0  ;;  %3189 = vrcp.f32 %v3846_v2  ;;  %v3187_v31 = vld [vmem:[#allocation10] ss:$0 sm:$0xff]  ;;  %v3188_v34 = vld [vmem:[#allocation11] ss:$0 sm:$0xff] }
  0x93   : > { %v3190_v3 = vpop.eup %3189 }
  0x94   : > { %v1321_v4 = vmul.f32 128.0, %v3190_v3  ;;  %vm1325_vm0 = vweird.f32 %v3190_v3 }
  0x95   : > { %1318 = vadd.xlane.f32.xlu0 %v1313_v1 }
  0x96   : > { %v1322_v5 = vsub.f32 1.0, %v1321_v4 }
  0x98   : > { %v1323_v6 = vmul.f32 %v3190_v3, %v1322_v5 }
  0x9a   : > { %v1324_v7 = vadd.f32 %v3190_v3, %v1323_v6 }
  0x9c   : > { %v1326_v8 = vsel %vm1325_vm0, %v3190_v3, %v1324_v7 }
 0x100   : > { %v1317_v9 = vpop.xlane.xlu0 %1316 }
 0x101   : > { %v1327_v10 = vmul.f32 %v1326_v8, %v1317_v9 }
 0x103   : > { %v1329_v11 = vsub.f32 %v1312_v0, %v1327_v10 }
 0x105   : > { %v1331_v12 = vmul.f32 %v1329_v11, %v1329_v11 }
 0x107   : > { %1333 = vadd.xlane.f32.xlu1 %v1331_v12 }
 0x108   : > { %v1319_v13 = vpop.xlane.xlu0 %1318 }
 0x109   : > { %v1328_v14 = vmul.f32 %v1326_v8, %v1319_v13 }
 0x10b   : > { %v1330_v15 = vsub.f32 %v1313_v1, %v1328_v14 }
 0x10d   : > { %v1332_v16 = vmul.f32 %v1330_v15, %v1330_v15 }
 0x10f   : > { %1335 = vadd.xlane.f32.xlu1 %v1332_v16 }
 0x17a   : > { %v1334_v17 = vpop.xlane.xlu1 %1333 }
 0x17b   : > { %v1337_v18 = vmul.f32 %v1334_v17, %v1326_v8 }
 0x17d   : > { %v1339_v19 = vadd.f32 1e-12, %v1337_v18 }
 0x17f   : > { %3191 = vrsqrt.f32 %v1339_v19  ;;  %vm1347_vm2 = vweird.f32 %v1339_v19 }
 0x182   : > { %v1336_v20 = vpop.xlane.xlu1 %1335 }
 0x183   : > { %v1338_v21 = vmul.f32 %v1336_v20, %v1326_v8 }
 0x185   : > { %v3192_v22 = vpop.eup %3191  ;;  %v1340_v23 = vadd.f32 1e-12, %v1338_v21 }
 0x186   : > { %v1342_v24 = vmul.f32 %v3192_v22, %v1339_v19  ;;  %vm1348_vm1 = vweird.f32 %v3192_v22 }
 0x187   : > { %3193 = vrsqrt.f32 %v1340_v23  ;;  %vm1349_vm3 = vmor %vm1347_vm2, %vm1348_vm1  ;;  %vm1357_vm5 = vweird.f32 %v1340_v23 }
 0x188   : > { %v1343_v25 = vmul.f32 %v3192_v22, %v1342_v24 }
 0x18a   : > { %v1344_v26 = vmul.f32 0.5, %v1343_v25 }
 0x18c   : > { %v1345_v27 = vsub.f32 1.5, %v1344_v26 }
 0x18d   : > { %v3194_v28 = vpop.eup %3193 }
 0x18e   : > { %v1346_v29 = vmul.f32 %v3192_v22, %v1345_v27  ;;  %v1352_v30 = vmul.f32 %v3194_v28, %v1340_v23  ;;  %vm1358_vm4 = vweird.f32 %v3194_v28 }
 0x18f   : > { %vm1359_vm6 = vmor %vm1357_vm5, %vm1358_vm4 }
 0x190   : > { %v1350_v32 = vsel %vm1349_vm3, %v3192_v22, %v1346_v29  ;;  %v1353_v33 = vmul.f32 %v3194_v28, %v1352_v30 }
 0x191   : > { %v1361_v35 = vmul.f32 %v1350_v32, %v1329_v11 }
 0x192   : > { %v1354_v36 = vmul.f32 0.5, %v1353_v33 }
 0x193   : > { %v1366_v37 = vmul.f32 %v3187_v31, %v1361_v35 }
 0x194   : > { %v1355_v38 = vsub.f32 1.5, %v1354_v36 }
 0x195   : > { %v1371_v39 = vadd.f32 %v3188_v34, %v1366_v37 }
 0x196   : > { %v1356_v40 = vmul.f32 %v3194_v28, %v1355_v38 }
 0x197   : > { %1373 = vst [vmem:[#allocation23] sm:$0xff] %v1371_v39 }
 0x198   : > { %v1360_v41 = vsel %vm1359_vm6, %v3194_v28, %v1356_v40 }
 0x199   : > { %v1362_v42 = vmul.f32 %v1360_v41, %v1330_v15 }
 0x19b   : > { %v1367_v43 = vmul.f32 %v3187_v31, %v1362_v42 }
 0x19d   : > { %v1372_v44 = vadd.f32 %v3188_v34, %v1367_v43 }
 0x19f   : > { %1374 = vst [vmem:[#allocation23 + $0x8] sm:$0xff] %v1372_v44 }
 0x1a0 PF: > { %v4282_v45 = vld [vmem:[#allocation23] sm:$0xff]  ;;  %v3847_v47 = vmov 128.0   ;;  %v1451_v50 = vld [vmem:[%s4222_s4 + $0x78] sm:$0xff]  ;;  %v1450_v53 = vld [vmem:[%s4222_s4 + $0x70] sm:$0xff]  ;;  %s4827_s21 = sld [smem:[#allocation41_spill]]  ;;  %vm1589_vm14 = vcmask 261120  }
 0x1a1   : > { %1379 = vadd.xlane.f32.xlu0 %v4282_v45  ;;  %3208 = vrcp.f32 %v3847_v47  ;;  %v1494_v51 = vld [vmem:[%s4267_s7 + $0x78] sm:$0xff]  ;;  %1456 = vmatpush.xpose.msra.mxu0 %v1451_v50  ;;  %v1493_v54 = vld [vmem:[%s4267_s7 + $0x70] sm:$0xff]  ;;  %v1449_v57 = vld [vmem:[%s4222_s4 + $0x68] sm:$0xff]  ;;  %s4829_s30 = sld [smem:[#allocation42_spill]]  ;;  %vm1622_vm15 = vcmask 523264   ;;  %vm1685_vm0 = vcmask 64512  }
 0x1a2   : > { %v1537_v52 = vld [vmem:[%s4269_s1 + $0x78] sm:$0xff]  ;;  %1499 = vmatpush.xpose.msra.mxu1 %v1494_v51  ;;  %v1536_v56 = vld [vmem:[%s4269_s1 + $0x70] sm:$0xff]  ;;  %v1492_v58 = vld [vmem:[%s4267_s7 + $0x68] sm:$0xff]  ;;  %s4837_s3 = sld [smem:[#allocation58_spill]]  ;;  %p3117_p3 = scmp.eq.s32.totalorder %s4008_s29, 1 }
 0x1a3   : > { %1542 = vmatpush.xpose.msra.mxu2 %v1537_v52  ;;  %v1535_v60 = vld [vmem:[%s4269_s1 + $0x68] sm:$0xff]  ;;  %v1448_v61 = vld [vmem:[%s4222_s4 + $0x60] sm:$0xff]  ;;  %v1447_v1 = vld [vmem:[%s4222_s4 + $0x58] sm:$0xff] }
 0x1a4   : > { %v1491_v62 = vld [vmem:[%s4267_s7 + $0x60] sm:$0xff]  ;;  %v1490_v2 = vld [vmem:[%s4267_s7 + $0x58] sm:$0xff]  ;;  %v1446_v7 = vld [vmem:[%s4222_s4 + $0x50] sm:$0xff] }
 0x1a5   : > { %1457 = vmatpush.xpose.msra.mxu0 %v1450_v53  ;;  %v1534_v0 = vld [vmem:[%s4269_s1 + $0x60] sm:$0xff]  ;;  %v1533_v4 = vld [vmem:[%s4269_s1 + $0x58] sm:$0xff]  ;;  %v1489_v8 = vld [vmem:[%s4267_s7 + $0x50] sm:$0xff] }
 0x1a6   : > { %v4285_v46 = vld [vmem:[#allocation23 + $0x8] sm:$0xff]  ;;  %1500 = vmatpush.xpose.msra.mxu1 %v1493_v54  ;;  %v1445_v12 = vld [vmem:[%s4222_s4 + $0x48] sm:$0xff]  ;;  %v1444_v17 = vld [vmem:[%s4222_s4 + $0x40] sm:$0xff]  ;;  %s4828_s22 = scalar_lea.vmem %s4827_s21, %s4231_s14  ;;  %s3849_s21 = smov 32  }
 0x1a7   : > { %v3209_v48 = vpop.eup %3208  ;;  %1543 = vmatpush.xpose.msra.mxu2 %v1536_v56  ;;  %v1532_v9 = vld [vmem:[%s4269_s1 + $0x50] sm:$0xff]  ;;  %v1488_v13 = vld [vmem:[%s4267_s7 + $0x48] sm:$0xff]  ;;  %v1487_v18 = vld [vmem:[%s4267_s7 + $0x40] sm:$0xff]  ;;  %s4830_s24 = scalar_lea.vmem %s4829_s30, %s4231_s14  ;;  %s3852_s30 = smov 128  }
 0x1a8   : > { %v1384_v49 = vmul.f32 128.0, %v3209_v48  ;;  %vm1388_vm7 = vweird.f32 %v3209_v48  ;;  %v1531_v14 = vld [vmem:[%s4269_s1 + $0x48] sm:$0xff]  ;;  %v1530_v19 = vld [vmem:[%s4269_s1 + $0x40] sm:$0xff]  ;;  %v1443_v22 = vld [vmem:[%s4222_s4 + $0x38] sm:$0xff]  ;;  %s2577_s9 = sshll.u32 %s4837_s3, 4  ;;  %s2578_s9 = int_to_ptr.hbm [resolvable:$true] %s2577_s9 }
 0x1a9   : > { %1381 = vadd.xlane.f32.xlu0 %v4285_v46  ;;  %1458 = vmatpush.xpose.msra.mxu0 %v1449_v57  ;;  %v1486_v23 = vld [vmem:[%s4267_s7 + $0x38] sm:$0xff]  ;;  %v1442_v25 = vld [vmem:[%s4222_s4 + $0x30] sm:$0xff]  ;;  %v1441_v28 = vld [vmem:[%s4222_s4 + $0x28] sm:$0xff] }
 0x1aa   : > { %v1385_v55 = vsub.f32 1.0, %v1384_v49  ;;  %1501 = vmatpush.xpose.msra.mxu1 %v1492_v58  ;;  %v1529_v24 = vld [vmem:[%s4269_s1 + $0x38] sm:$0xff]  ;;  %v1485_v26 = vld [vmem:[%s4267_s7 + $0x30] sm:$0xff]  ;;  %v1484_v29 = vld [vmem:[%s4267_s7 + $0x28] sm:$0xff] }
 0x1ab   : > { %1544 = vmatpush.xpose.msra.mxu2 %v1535_v60  ;;  %v1528_v27 = vld [vmem:[%s4269_s1 + $0x30] sm:$0xff]  ;;  %v1527_v30 = vld [vmem:[%s4269_s1 + $0x28] sm:$0xff]  ;;  %v1440_v31 = vld [vmem:[%s4222_s4 + $0x20] sm:$0xff] }
 0x1ac   : > { %v1386_v59 = vmul.f32 %v3209_v48, %v1385_v55  ;;  %v1483_v32 = vld [vmem:[%s4267_s7 + $0x20] sm:$0xff]  ;;  %v1439_v34 = vld [vmem:[%s4222_s4 + $0x18] sm:$0xff]  ;;  %v1438_v37 = vld [vmem:[%s4222_s4 + $0x10] sm:$0xff] }
 0x1ad   : > { %1459 = vmatpush.xpose.msra.mxu0 %v1448_v61  ;;  %v1526_v33 = vld [vmem:[%s4269_s1 + $0x20] sm:$0xff]  ;;  %v1482_v35 = vld [vmem:[%s4267_s7 + $0x18] sm:$0xff]  ;;  %v1481_v38 = vld [vmem:[%s4267_s7 + $0x10] sm:$0xff] }
 0x1ae   : > { %v1387_v63 = vadd.f32 %v3209_v48, %v1386_v59  ;;  %1502 = vmatpush.xpose.msra.mxu1 %v1491_v62  ;;  %v1525_v36 = vld [vmem:[%s4269_s1 + $0x18] sm:$0xff]  ;;  %v1524_v39 = vld [vmem:[%s4269_s1 + $0x10] sm:$0xff]  ;;  %v1437_v40 = vld [vmem:[%s4222_s4 + $0x8] sm:$0xff] }
 0x1af   : > { %1545 = vmatpush.xpose.msra.mxu2 %v1534_v0  ;;  %v1480_v41 = vld [vmem:[%s4267_s7 + $0x8] sm:$0xff]  ;;  %v1436_v43 = vld [vmem:[%s4222_s4] sm:$0xff]  ;;  %v3195_v62 = vld [vmem:[%s4828_s22] ss:$0 sm:$0xff]  ;;  %s4832_s4 = sld [smem:[#allocation44_spill]] }
 0x1b0   : > { %v4302_v3 = vsel %vm1388_vm7, %v3209_v48, %v1387_v63  ;;  %v1523_v42 = vld [vmem:[%s4269_s1 + $0x8] sm:$0xff]  ;;  %v1479_v44 = vld [vmem:[%s4267_s7] sm:$0xff]  ;;  %s3848_s7 = smov 96  }
 0x1b1   : > { %1460 = vmatpush.xpose.msra.mxu0 %v1447_v1  ;;  %v1522_v47 = vld [vmem:[%s4269_s1] sm:$0xff] }
 0x1b2   : > { %1503 = vmatpush.xpose.msra.mxu1 %v1490_v2  ;;  %v3196_v2 = vld [vmem:[%s4830_s24] ss:$0 sm:$0xff]  ;;  %s3853_s24 = smov 8  }
 0x1b3   : > { %1546 = vmatpush.xpose.msra.mxu2 %v1533_v4 }
 0x1b5   : > { %1461 = vmatpush.xpose.msra.mxu0 %v1446_v7 }
 0x1b6   : > { %1504 = vmatpush.xpose.msra.mxu1 %v1489_v8 }
 0x1b7   : > { %1547 = vmatpush.xpose.msra.mxu2 %v1532_v9 }
 0x1b9   : > { %1462 = vmatpush.xpose.msra.mxu0 %v1445_v12 }
 0x1ba   : > { %1505 = vmatpush.xpose.msra.mxu1 %v1488_v13  ;;  %v3198_v13 = vld [vmem:[%s1293_s11] ss:$0 sm:$0xff]  ;;  %s4833_s11 = scalar_lea.vmem %s4832_s4, %s4231_s14  ;;  %s3851_s14 = smov [#allocation23]  }
 0x1bb   : > { %1548 = vmatpush.xpose.msra.mxu2 %v1531_v14 }
 0x1bd   : > { %1463 = vmatpush.xpose.msra.mxu0 %v1444_v17 }
 0x1be   : > { %1506 = vmatpush.xpose.msra.mxu1 %v1487_v18 }
 0x1bf   : > { %1549 = vmatpush.xpose.msra.mxu2 %v1530_v19 }
 0x1c1   : > { %1464 = vmatpush.xpose.msra.mxu0 %v1443_v22 }
 0x1c2   : > { %1507 = vmatpush.xpose.msra.mxu1 %v1486_v23 }
 0x1c3   : > { %1550 = vmatpush.xpose.msra.mxu2 %v1529_v24 }
 0x1c5   : > { %1465 = vmatpush.xpose.msra.mxu0 %v1442_v25 }
 0x1c6   : > { %1508 = vmatpush.xpose.msra.mxu1 %v1485_v26 }
 0x1c7   : > { %1551 = vmatpush.xpose.msra.mxu2 %v1528_v27 }
 0x1c9   : > { %1466 = vmatpush.xpose.msra.mxu0 %v1441_v28 }
 0x1ca   : > { %1509 = vmatpush.xpose.msra.mxu1 %v1484_v29 }
 0x1cb   : > { %1552 = vmatpush.xpose.msra.mxu2 %v1527_v30  ;;  %v4408_v30 = vld [vmem:[#allocation8] sm:$0xff] }
 0x1cd   : > { %1467 = vmatpush.xpose.msra.mxu0 %v1440_v31 }
 0x1ce   : > { %1510 = vmatpush.xpose.msra.mxu1 %v1483_v32  ;;  %v4412_v32 = vld [vmem:[#allocation7] sm:$0xff] }
 0x1cf   : > { %1553 = vmatpush.xpose.msra.mxu2 %v1526_v33 }
 0x1d1   : > { %1468 = vmatpush.xpose.msra.mxu0 %v1439_v34 }
 0x1d2   : > { %1511 = vmatpush.xpose.msra.mxu1 %v1482_v35 }
 0x1d3   : > { %1554 = vmatpush.xpose.msra.mxu2 %v1525_v36 }
 0x1d5   : > { %1469 = vmatpush.xpose.msra.mxu0 %v1438_v37 }
 0x1d6   : > { %1512 = vmatpush.xpose.msra.mxu1 %v1481_v38 }
 0x1d7   : > { %1555 = vmatpush.xpose.msra.mxu2 %v1524_v39 }
 0x1d9   : > { %1470 = vmatpush.xpose.msra.mxu0 %v1437_v40 }
 0x1da   : > { %1513 = vmatpush.xpose.msra.mxu1 %v1480_v41 }
 0x1db   : > { %1556 = vmatpush.xpose.msra.mxu2 %v1523_v42 }
 0x1dd   : > { %1471 = vmatpush.xpose.msra.mxu0 %v1436_v43 }
 0x1de   : > { %1514 = vmatpush.xpose.msra.mxu1 %v1479_v44 }
 0x1df   : > { %1557 = vmatpush.xpose.msra.mxu2 %v1522_v47 }
 0x214   : > { %v1380_v5 = vpop.xlane.xlu0 %1379 }
 0x215   : > { %v1390_v6 = vmul.f32 %v4302_v3, %v1380_v5 }
 0x217   : > { %v4310_v10 = vsub.f32 %v4282_v45, %v1390_v6 }
 0x219   : > { %v1394_v11 = vmul.f32 %v4310_v10, %v4310_v10 }
 0x21b   : > { %1396 = vadd.xlane.f32.xlu1 %v1394_v11 }
 0x21c   : > { %v1382_v15 = vpop.xlane.xlu0 %1381 }
 0x21d   : > { %v1391_v16 = vmul.f32 %v4302_v3, %v1382_v15 }
 0x21f   : > { %v4322_v20 = vsub.f32 %v4285_v46, %v1391_v16  ;;  %v4375_v16 = vld [vmem:[%s1096_s13] ss:$0 sm:$0xff]  ;;  %s3850_s13 = smov 64  }
 0x221   : > { %v1395_v21 = vmul.f32 %v4322_v20, %v4322_v20 }
 0x223   : > { %1398 = vadd.xlane.f32.xlu1 %v1395_v21  ;;  %v3197_v21 = vld [vmem:[%s4833_s11] ss:$0 sm:$0xff] }
 0x28e   : > { %v1397_v48 = vpop.xlane.xlu1 %1396 }
 0x28f   : > { %v1400_v49 = vmul.f32 %v1397_v48, %v4302_v3 }
 0x291   : > { %v1402_v50 = vadd.f32 1e-12, %v1400_v49 }
 0x293   : > { %3210 = vrsqrt.f32 %v1402_v50  ;;  %vm1410_vm9 = vweird.f32 %v1402_v50 }
 0x296   : > { %v1399_v51 = vpop.xlane.xlu1 %1398 }
 0x297   : > { %v1401_v52 = vmul.f32 %v1399_v51, %v4302_v3 }
 0x299   : > { %v3211_v53 = vpop.eup %3210  ;;  %v1403_v54 = vadd.f32 1e-12, %v1401_v52 }
 0x29a   : > { %v1405_v55 = vmul.f32 %v3211_v53, %v1402_v50  ;;  %vm1411_vm8 = vweird.f32 %v3211_v53 }
 0x29b   : > { %3212 = vrsqrt.f32 %v1403_v54  ;;  %vm1412_vm10 = vmor %vm1410_vm9, %vm1411_vm8  ;;  %vm1420_vm12 = vweird.f32 %v1403_v54 }
 0x29c   : > { %v1406_v56 = vmul.f32 %v3211_v53, %v1405_v55 }
 0x29e   : > { %v1407_v57 = vmul.f32 0.5, %v1406_v56 }
 0x2a0   : > { %v1408_v58 = vsub.f32 1.5, %v1407_v57 }
 0x2a1   : > { %v3213_v59 = vpop.eup %3212 }
 0x2a2   : > { %v1409_v60 = vmul.f32 %v3211_v53, %v1408_v58  ;;  %v1415_v61 = vmul.f32 %v3213_v59, %v1403_v54  ;;  %vm1421_vm11 = vweird.f32 %v3213_v59 }
 0x2a3   : > { %vm1422_vm13 = vmor %vm1420_vm12, %vm1421_vm11 }
 0x2a4   : > { %v1413_v63 = vsel %vm1412_vm10, %v3211_v53, %v1409_v60  ;;  %v1416_v0 = vmul.f32 %v3213_v59, %v1415_v61 }
 0x2a5   : > { %v1424_v1 = vmul.f32 %v1413_v63, %v4310_v10 }
 0x2a6   : > { %v1417_v4 = vmul.f32 0.5, %v1416_v0 }
 0x2a7   : > { %v1429_v5 = vmul.f32 %v3195_v62, %v1424_v1 }
 0x2a8   : > { %v1418_v6 = vsub.f32 1.5, %v1417_v4 }
 0x2a9   : > { %v1434_v7 = vadd.f32 %v3196_v2, %v1429_v5 }
 0x2aa   : > { %v1419_v8 = vmul.f32 %v3213_v59, %v1418_v6 }
 0x2ab   : > { %1472 = vmatmul.f32.vlgmr.msra.gmra.mxu0 %v1434_v7  ;;  %1515 = vmatmul.f32.vlgmr.msra.gmra.mxu1 %v1434_v7 }
 0x2ac   : > { %v1423_v9 = vsel %vm1422_vm13, %v3213_v59, %v1419_v8  ;;  %1558 = vmatmul.f32.vlgmr.msra.gmra.mxu2 %v1434_v7 }
 0x2ad   : > { %v1425_v10 = vmul.f32 %v1423_v9, %v4322_v20 }
 0x2af   : > { %v1430_v11 = vmul.f32 %v3195_v62, %v1425_v10 }
 0x2b1   : > { %v1435_v12 = vadd.f32 %v3196_v2, %v1430_v11 }
 0x2b3   : > { %1475 = vmatmul.f32.gmra.mxu0 %v1435_v12  ;;  %1518 = vmatmul.f32.gmra.mxu1 %v1435_v12 }
 0x2b4   : > { %1561 = vmatmul.f32.gmra.mxu2 %v1435_v12 }
 0x328   : > { %v1516_v14 = vpop.f32.mrf.mxu1  ;;  %v1473_v17 = vpop.f32.mrf.mxu0 }
 0x329   : > { %v4369_v15 = vadd.f32 %v3198_v13, %v1516_v14  ;;  %v4393_v25 = vadd.f32 %v3197_v21, %v1473_v17 }
 0x32b   : > { %1820 = vrot.lane.b32.xlu2 %v4369_v15, %s3848_s7  ;;  %v1598_v23 = vsub.f32 0.0, %v4369_v15  ;;  %v1571_v27 = vsub.f32 0.0, %v4393_v25  ;;  %v1596_v4 = vmul.f32 %v4408_v30, %v4369_v15  ;;  %v1569_v9 = vmul.f32 %v4408_v30, %v4393_v25 }
 0x32f   : > { %v1559_v18 = vpop.f32.mrf.mxu2 }
 0x330   : > { %v4378_v19 = vadd.f32 %v4375_v16, %v1559_v18  ;;  %v1519_v20 = vpop.f32.mrf.mxu1  ;;  %v1476_v26 = vpop.f32.mrf.mxu0 }
 0x331   : > { %v4385_v22 = vadd.f32 %v3198_v13, %v1519_v20  ;;  %v4397_v28 = vadd.f32 %v3197_v21, %v1476_v26 }
 0x332   : > { %1752 = vmatpush.msrb.mxu2 %v4378_v19 }
 0x333   : > { %1814 = vrot.lane.b32.xlu2 %v1598_v23, %s3849_s21  ;;  %1822 = vrot.lane.b32.xlu1 %v4385_v22, %s3848_s7  ;;  %v1599_v24 = vsub.f32 0.0, %v4385_v22  ;;  %v1572_v29 = vsub.f32 0.0, %v4397_v28 }
 0x335   : > { %1816 = vrot.lane.b32.xlu0 %v1599_v24, %s3849_s21 }
 0x337   : > { %v1562_v21 = vpop.f32.mrf.mxu2 }
 0x338   : > { %v1563_v26 = vadd.f32 %v4375_v16, %v1562_v21 }
 0x33b   : > { %1786 = vrot.lane.b32.xlu2 %v1571_v27, %s3849_s21 }
 0x33d   : > { %1794 = vrot.lane.b32.xlu0 %v4397_v28, %s3848_s7 }
 0x343   : > { %1792 = vrot.lane.b32.xlu2 %v4393_v25, %s3848_s7 }
 0x34b   : > { %1788 = vrot.lane.b32.xlu2 %v1572_v29, %s3849_s21 }
 0x353   : > { %1781 = vrot.lane.b32.xlu2 %v4408_v30, %s3850_s13 }
 0x385   : > { %v1821_v31 = vpop.permute.xlu2 %1820 }
 0x38d   : > { %v1815_v33 = vpop.permute.xlu2 %1814 }
 0x38e   : > { %v1826_v34 = vsel %vm1589_vm14, %v1815_v33, %v1821_v31  ;;  %v1570_v33 = vmul.f32 %v4408_v30, %v4397_v28 }
 0x38f   : > { %v1828_v35 = vmul.f32 %v1826_v34, %v4412_v32 }
 0x391   : > { %1832 = vrot.lane.b32.xlu1 %v1828_v35, %s3850_s13 }
 0x395   : > { %v1787_v36 = vpop.permute.xlu2 %1786 }
 0x39d   : > { %v1793_v37 = vpop.permute.xlu2 %1792 }
 0x39e   : > { %v1798_v38 = vsel %vm1589_vm14, %v1787_v36, %v1793_v37  ;;  %v3200_v36 = vld [vmem:[#allocation5] ss:$0 sm:$0xff] }
 0x39f   : > { %v1800_v39 = vmul.f32 %v1798_v38, %v4412_v32 }
 0x3a1   : > { %1804 = vrot.lane.b32.xlu2 %v1800_v39, %s3850_s13 }
 0x3a5   : > { %v1823_v40 = vpop.permute.xlu1 %1822  ;;  %v1789_v44 = vpop.permute.xlu2 %1788 }
 0x3a7   : > { %v1817_v41 = vpop.permute.xlu0 %1816 }
 0x3a8   : > { %v1827_v42 = vsel %vm1589_vm14, %v1817_v41, %v1823_v40 }
 0x3a9   : > { %v1829_v43 = vmul.f32 %v1827_v42, %v4412_v32  ;;  %1610 = vrot.lane.b32.xlu2 %v4369_v15, %s3849_s21 }
 0x3ab   : > { %1834 = vrot.lane.b32.xlu0 %v1829_v43, %s3850_s13 }
 0x3ad   : > { %v1782_v50 = vpop.permute.xlu2 %1781 }
 0x3ae   : > { %v1784_v51 = vmul.f32 %v1782_v50, %v4393_v25  ;;  %v1812_v54 = vmul.f32 %v1782_v50, %v4369_v15  ;;  %v1813_v57 = vmul.f32 %v1782_v50, %v4385_v22  ;;  %v1785_v61 = vmul.f32 %v1782_v50, %v4397_v28 }
 0x3af   : > { %v1795_v47 = vpop.permute.xlu0 %1794 }
 0x3b0   : > { %v1799_v48 = vsel %vm1589_vm14, %v1789_v44, %v1795_v47 }
 0x3b1   : > { %v1801_v49 = vmul.f32 %v1799_v48, %v4412_v32 }
 0x3b3   : > { %1602 = vrot.lane.b32.xlu0 %v1598_v23, %s3848_s7  ;;  %1806 = vrot.lane.b32.xlu1 %v1801_v49, %s3850_s13 }
 0x3bb   : > { %1583 = vrot.lane.b32.xlu0 %v4393_v25, %s3849_s21  ;;  %1575 = vrot.lane.b32.xlu1 %v1571_v27, %s3848_s7 }
 0x3fb   : > { %v1805_v52 = vpop.permute.xlu2 %1804 }
 0x3fc   : > { %v1810_v53 = vadd.f32 %v1805_v52, %v1784_v51 }
 0x3fe   : > { %1841 = vrot.lane.b32.xlu0 %v1810_v53, %s3850_s13 }
 0x403   : > { %v1833_v55 = vpop.permute.xlu1 %1832  ;;  %v1611_v60 = vpop.permute.xlu2 %1610 }
 0x404   : > { %v1838_v56 = vadd.f32 %v1833_v55, %v1812_v54 }
 0x406   : > { %1844 = vrot.lane.b32.xlu2 %v1838_v56, %s3850_s13  ;;  %1612 = vrot.lane.b32.xlu0 %v4385_v22, %s3849_s21 }
 0x41d   : > { %v1835_v58 = vpop.permute.xlu0 %1834 }
 0x41e   : > { %v1839_v59 = vadd.f32 %v1835_v58, %v1813_v57 }
 0x420   : > { %1874 = vrot.lane.b32.xlu1 %v1839_v59, %s3850_s13 }
 0x425   : > { %v1603_v62 = vpop.permute.xlu0 %1602  ;;  %v1807_v63 = vpop.permute.xlu1 %1806 }
 0x426   : > { %v1616_v0 = vsel %vm1589_vm14, %v1603_v62, %v1611_v60  ;;  %v1811_v1 = vadd.f32 %v1807_v63, %v1785_v61 }
 0x427   : > { %v1618_v2 = vmul.f32 %v1616_v0, %v4412_v32 }
 0x428   : > { %1604 = vrot.lane.b32.xlu1 %v1599_v24, %s3848_s7  ;;  %1871 = vrot.lane.b32.xlu2 %v1811_v1, %s3850_s13  ;;  %v1597_v24 = vmul.f32 %v4408_v30, %v4385_v22 }
 0x429   : > { %v1620_v5 = vadd.f32 %v1618_v2, %v1596_v4 }
 0x42b   : > { %2984 = vmatpush.xpose.msk.msrb.mxu0 %vm1622_vm15, %v1620_v5 }
 0x42d   : > { %v1584_v6 = vpop.permute.xlu0 %1583  ;;  %v1576_v7 = vpop.permute.xlu1 %1575 }
 0x42e   : > { %v1590_v8 = vsel %vm1589_vm14, %v1576_v7, %v1584_v6 }
 0x42f   : > { %v1592_v10 = vmul.f32 %v1590_v8, %v4412_v32 }
 0x430   : > { %1585 = vrot.lane.b32.xlu1 %v4397_v28, %s3849_s21  ;;  %1577 = vrot.lane.b32.xlu2 %v1572_v29, %s3848_s7  ;;  %v3201_v28 = vld [vmem:[#allocation5 + $0x1] ss:$0 sm:$0xff] }
 0x431   : > { %v1594_v11 = vadd.f32 %v1592_v10, %v1569_v9 }
 0x433   : > { %2985 = vmatmul.msk.f32.vlgmr.msrb.gmra.mxu0 %vm1622_vm15, %v1594_v11 }
 0x460   : > { %v1845_v12 = vpop.permute.xlu2 %1844 }
 0x461   : > { %2990 = vmatpush.xpose.msk.msra.mxu0 %vm1622_vm15, %v1845_v12 }
 0x470   : > { %v1842_v13 = vpop.permute.xlu0 %1841 }
 0x471   : > { %2991 = vmatmul.msk.f32.vlgmr.msra.gmra.mxu0 %vm1622_vm15, %v1842_v13 }
 0x478   : > { %v1613_v17 = vpop.permute.xlu0 %1612 }
 0x482   : > { %v1872_v15 = vpop.permute.xlu2 %1871 }
 0x48a   : > { %v1578_v27 = vpop.permute.xlu2 %1577 }
 0x492   : > { %v1875_v14 = vpop.permute.xlu1 %1874 }
 0x493   : > { %2992 = vmatpush.xpose.msk.msra.mxu3 %vm1622_vm15, %v1875_v14 }
 0x496   : > { %2993 = vmatmul.msk.f32.vlgmr.msra.gmra.mxu3 %vm1622_vm15, %v1872_v15 }
 0x49a   : > { %v1605_v18 = vpop.permute.xlu1 %1604 }
 0x49b   : > { %v1617_v20 = vsel %vm1589_vm14, %v1605_v18, %v1613_v17 }
 0x49c   : > { %v1619_v23 = vmul.f32 %v1617_v20, %v4412_v32 }
 0x49e   : > { %v1621_v25 = vadd.f32 %v1619_v23, %v1597_v24 }
 0x4a0   : > { %2986 = vmatpush.xpose.msk.msrb.mxu1 %vm1622_vm15, %v1621_v25 }
 0x4a2   : > { %v1586_v29 = vpop.permute.xlu1 %1585 }
 0x4a3   : > { %v1591_v31 = vsel %vm1589_vm14, %v1578_v27, %v1586_v29 }
 0x4a4   : > { %1775 = vmatpush.msra.mxu1 %v1563_v26  ;;  %v1593_v34 = vmul.f32 %v1591_v31, %v4412_v32 }
 0x4a6   : > { %v1595_v35 = vadd.f32 %v1593_v34, %v1570_v33 }
 0x4a8   : > { %2987 = vmatmul.msk.f32.vlgmr.msrb.gmra.mxu1 %vm1622_vm15, %v1595_v35 }
 0x4b0   : > { %v1646_v22 = vpop.f32.mrf.mxu0 }
 0x4b1   : > { %v1675_v37 = vmul.f32 0.125, %v1646_v22 }
 0x4b3   : > { %v1683_v16 = vadd.f32 %v3200_v36, %v1675_v37 }
 0x4b5   : > { %v1686_v38 = vsel %vm1685_vm0, %v1683_v16, -inf }
 0x4b6   : > { %1687 = vmax.xlane.f32.xlu1 %v1686_v38 }
 0x4ee   : > { %v1867_v39 = vpop.f32.mrf.mxu0 }
 0x4ef   : > { %v1900_v40 = vmul.f32 0.125, %v1867_v39 }
 0x4f1   : > { %v1902_v41 = vadd.f32 %v3200_v36, %v1900_v40 }
 0x4f3   : > { %v1904_v42 = vsel %vm1685_vm0, %v1902_v41, -inf }
 0x4f4   : > { %1905 = vmax.xlane.f32.xlu0 %v1904_v42 }
 0x519   : > { %v1897_v30 = vpop.f32.mrf.mxu3 }
 0x51a   : > { %v1901_v32 = vmul.f32 0.125, %v1897_v30 }
 0x51c   : > { %v1903_v43 = vadd.f32 %v3201_v28, %v1901_v32 }
 0x51e   : > { %v1907_v44 = vsel %vm1685_vm0, %v1903_v43, -inf }
 0x51f   : > { %1908 = vmax.xlane.f32.xlu2 %v1907_v44 }
 0x525   : > { %v1672_v47 = vpop.f32.mrf.mxu1 }
 0x526   : > { %v1676_v48 = vmul.f32 0.125, %v1672_v47 }
 0x528   : > { %v1684_v49 = vadd.f32 %v3201_v28, %v1676_v48 }
 0x529   : > { %v1688_v56 = vpop.xlane.xlu1 %1687 }
 0x52a   : > { %v1689_v50 = vsel %vm1685_vm0, %v1684_v49, -inf  ;;  %v1692_v59 = vsub.f32 %v1683_v16, %v1688_v56 }
 0x52b   : > { %1690 = vmax.xlane.f32.xlu2 %v1689_v50 }
 0x52c   : > { %v1694_v61 = vmul.f32 1.442695, %v1692_v59 }
 0x543   : > { %1980 = vrot.lane.b32.xlu2 %v1563_v26, %s3850_s13 }
 0x567   : > { %v1906_v51 = vpop.xlane.xlu0 %1905 }
 0x568   : > { %v1910_v52 = vsub.f32 %v1902_v41, %v1906_v51 }
 0x56a   : > { %v1912_v53 = vmul.f32 1.442695, %v1910_v52 }
 0x56c   : > { %3214 = vpow2.f32 %v1912_v53 }
 0x572   : > { %v3215_v54 = vpop.eup %3214 }
 0x573   : > { %v1916_v55 = vsel %vm1685_vm0, %v3215_v54, 0.0 }
 0x574   : > { %1917 = vadd.xlane.f32.xlu0 %v1916_v55 }
 0x588   : > { %1953 = vrot.lane.b32.xlu0 %v4378_v19, %s3850_s13 }
 0x592   : > { %v1909_v57 = vpop.xlane.xlu2 %1908 }
 0x593   : > { %v1911_v58 = vsub.f32 %v1903_v43, %v1909_v57 }
 0x595   : > { %v1914_v60 = vmul.f32 1.442695, %v1911_v58 }
 0x597   : > { %3216 = vpow2.f32 %v1914_v60 }
 0x598   : > { %3218 = vpow2.f32 %v1694_v61  ;;  %v2031_v61 = vld [vmem:[%s4272_s5 + $0x78] sm:$0xff] }
 0x59d   : > { %v3217_v62 = vpop.eup %3216 }
 0x59e   : > { %v1691_v63 = vpop.xlane.xlu2 %1690  ;;  %v1919_v0 = vsel %vm1685_vm0, %v3217_v62, 0.0  ;;  %v4482_v4 = vpop.eup %3218 }
 0x59f   : > { %v1693_v1 = vsub.f32 %v1684_v49, %v1691_v63  ;;  %1920 = vadd.xlane.f32.xlu1 %v1919_v0  ;;  %v1698_v19 = vsel %vm1685_vm0, %v4482_v4, 0.0  ;;  %v2029_v63 = vld [vmem:[%s4272_s5 + $0x68] sm:$0xff]  ;;  %v2028_v0 = vld [vmem:[%s4272_s5 + $0x60] sm:$0xff] }
 0x5a1   : > { %v1696_v2 = vmul.f32 1.442695, %v1693_v1  ;;  %v2027_v1 = vld [vmem:[%s4272_s5 + $0x58] sm:$0xff] }
 0x5a3   : > { %3220 = vpow2.f32 %v1696_v2  ;;  %v2026_v2 = vld [vmem:[%s4272_s5 + $0x50] sm:$0xff] }
 0x5a6   : > { %v1981_v23 = vpop.permute.xlu2 %1980 }
 0x5a7   : > { %1699 = vadd.xlane.f32.xlu1 %v1698_v19  ;;  %v2025_v19 = vld [vmem:[%s4272_s5 + $0x48] sm:$0xff] }
 0x5a9   : > { %v4486_v5 = vpop.eup %3220 }
 0x5aa   : > { %v1701_v6 = vsel %vm1685_vm0, %v4486_v5, 0.0 }
 0x5af   : > { %1702 = vadd.xlane.f32.xlu1 %v1701_v6  ;;  %v2023_v6 = vld [vmem:[%s4272_s5 + $0x38] sm:$0xff] }
 0x5e7   : > { %v1918_v7 = vpop.xlane.xlu0 %1917 }
 0x5e8   : > { %3222 = vrcp.f32 %v1918_v7  ;;  %v1933_v11 = vand.u32 2147483648, %v1918_v7  ;;  %v1931_v13 = vand.u32 2147483647, %v1918_v7  ;;  %vm1927_vm2 = vweird.f32 %v1918_v7 }
 0x5ea   : > { %v1934_v15 = vor.u32 1.1754944e-38, %v1933_v11  ;;  %vm1932_vm4 = vcmp.eq.f32.partialorder %v1931_v13, 8.507059e+37  ;;  %v2018_v11 = vld [vmem:[%s4272_s5 + $0x10] sm:$0xff]  ;;  %v2016_v13 = vld [vmem:[%s4272_s5] sm:$0xff] }
 0x5ee   : > { %v3223_v8 = vpop.eup %3222 }
 0x5ef   : > { %v1923_v9 = vmul.f32 %v3223_v8, %v1918_v7  ;;  %vm1928_vm1 = vweird.f32 %v3223_v8  ;;  %v2022_v7 = vld [vmem:[%s4272_s5 + $0x30] sm:$0xff] }
 0x5f0   : > { %vm1929_vm3 = vmor %vm1927_vm2, %vm1928_vm1 }
 0x5f1   : > { %v1924_v10 = vsub.f32 1.0, %v1923_v9  ;;  %v2020_v9 = vld [vmem:[%s4272_s5 + $0x20] sm:$0xff] }
 0x5f3   : > { %v1925_v12 = vmul.f32 %v3223_v8, %v1924_v10  ;;  %v2019_v10 = vld [vmem:[%s4272_s5 + $0x18] sm:$0xff] }
 0x5f5   : > { %v1926_v14 = vadd.f32 %v3223_v8, %v1925_v12  ;;  %v2017_v12 = vld [vmem:[%s4272_s5 + $0x8] sm:$0xff] }
 0x5f7   : > { %v1930_v17 = vsel %vm1929_vm3, %v3223_v8, %v1926_v14  ;;  %v2021_v8 = vld [vmem:[%s4272_s5 + $0x28] sm:$0xff] }
 0x5f8   : > { %v1935_v18 = vsel %vm1932_vm4, %v1934_v15, %v1930_v17 }
 0x5f9   : > { %v1936_v20 = vmul.f32 %v3215_v54, %v1935_v18 }
 0x5fa   : > { %v1954_v21 = vpop.permute.xlu0 %1953 }
 0x5fb   : > { %1974 = vmatpush.msrb.mxu3 %v1954_v21 }
 0x5fc   : > { %2994 = vmatmul.msk.f32.vlgmr.msrb.gmra.mxu3 %vm1685_vm0, %v1936_v20 }
 0x5fd   : > { %2001 = vmatpush.msra.mxu3 %v1981_v23  ;;  %v3202_v23 = vld [vmem:[%s1115_s10] ss:$0 sm:$0xff] }
 0x5ff   : > { %2036 = vmatpush.xpose.msrb.mxu3 %v2031_v61 }
 0x612   : > { %v1921_v24 = vpop.xlane.xlu1 %1920 }
 0x613   : > { %3224 = vrcp.f32 %v1921_v24  ;;  %v1948_v31 = vand.u32 2147483648, %v1921_v24  ;;  %v1946_v34 = vand.u32 2147483647, %v1921_v24  ;;  %vm1942_vm6 = vweird.f32 %v1921_v24 }
 0x615   : > { %v1949_v22 = vor.u32 1.1754944e-38, %v1948_v31  ;;  %vm1947_vm8 = vcmp.eq.f32.partialorder %v1946_v34, 8.507059e+37 }
 0x619   : > { %v3225_v25 = vpop.eup %3224 }
 0x61a   : > { %v1938_v26 = vmul.f32 %v3225_v25, %v1921_v24  ;;  %v1700_v27 = vpop.xlane.xlu1 %1699  ;;  %vm1943_vm5 = vweird.f32 %v3225_v25 }
 0x61b   : > { %3226 = vrcp.f32 %v1700_v27  ;;  %vm1944_vm7 = vmor %vm1942_vm6, %vm1943_vm5  ;;  %v1715_v42 = vand.u32 2147483648, %v1700_v27  ;;  %v1713_v30 = vand.u32 2147483647, %v1700_v27  ;;  %vm1709_vm10 = vweird.f32 %v1700_v27 }
 0x61c   : > { %v1939_v29 = vsub.f32 1.0, %v1938_v26 }
 0x61d   : > { %v1716_v44 = vor.u32 1.1754944e-38, %v1715_v42  ;;  %vm1714_vm12 = vcmp.eq.f32.partialorder %v1713_v30, 8.507059e+37  ;;  %v2142_v42 = vld [vmem:[%s4277_s18 + $0xe8] sm:$0xff] }
 0x61e   : > { %v1940_v33 = vmul.f32 %v3225_v25, %v1939_v29  ;;  %v2174_v30 = vld [vmem:[%s4277_s18 + $0x1e8] sm:$0xff] }
 0x620   : > { %v1941_v35 = vadd.f32 %v3225_v25, %v1940_v33 }
 0x621   : > { %v3227_v36 = vpop.eup %3226 }
 0x622   : > { %v1945_v37 = vsel %vm1944_vm7, %v3225_v25, %v1941_v35  ;;  %v1705_v16 = vmul.f32 %v3227_v36, %v1700_v27  ;;  %v1703_v38 = vpop.xlane.xlu1 %1702  ;;  %vm1710_vm9 = vweird.f32 %v3227_v36 }
 0x623   : > { %v1950_v39 = vsel %vm1947_vm8, %v1949_v22, %v1945_v37  ;;  %3228 = vrcp.f32 %v1703_v38  ;;  %vm1711_vm11 = vmor %vm1709_vm10, %vm1710_vm9  ;;  %v1730_v52 = vand.u32 2147483648, %v1703_v38  ;;  %v1728_v54 = vand.u32 2147483647, %v1703_v38  ;;  %v2144_v22 = vld [vmem:[%s4277_s18 + $0xf8] sm:$0xff] }
 0x624   : > { %v1706_v40 = vsub.f32 1.0, %v1705_v16  ;;  %v1951_v41 = vmul.f32 %v3217_v62, %v1950_v39  ;;  %vm1724_vm14 = vweird.f32 %v1703_v38  ;;  %v2030_v62 = vld [vmem:[%s4272_s5 + $0x70] sm:$0xff]  ;;  %2210 = vmatpush.xpose.msrb.mxu1 %v2144_v22  ;;  %v2176_v37 = vld [vmem:[%s4277_s18 + $0x1f8] sm:$0xff] }
 0x625   : > { %v1731_v56 = vor.u32 1.1754944e-38, %v1730_v52  ;;  %vm1729_vm2 = vcmp.eq.f32.partialorder %v1728_v54, 8.507059e+37  ;;  %2037 = vmatpush.xpose.msrb.mxu3 %v2030_v62  ;;  %v2127_v16 = vld [vmem:[%s4277_s18 + $0x70] sm:$0xff]  ;;  %v2121_v62 = vld [vmem:[%s4277_s18 + $0x40] sm:$0xff]  ;;  %v2130_v22 = vld [vmem:[%s4277_s18 + $0x88] sm:$0xff] }
 0x626   : > { %v1707_v28 = vmul.f32 %v3227_v36, %v1706_v40  ;;  %2995 = vmatmul.msk.f32.vlgmr.msra.gmra.mxu3 %vm1685_vm0, %v1951_v41  ;;  %v2159_v39 = vld [vmem:[%s4277_s18 + $0x170] sm:$0xff]  ;;  %v2126_v41 = vld [vmem:[%s4277_s18 + $0x68] sm:$0xff] }
 0x627   : > { %v2175_v40 = vld [vmem:[%s4277_s18 + $0x1f0] sm:$0xff] }
 0x628   : > { %v1708_v32 = vadd.f32 %v3227_v36, %v1707_v28  ;;  %v2158_v28 = vld [vmem:[%s4277_s18 + $0x168] sm:$0xff]  ;;  %v2123_v52 = vld [vmem:[%s4277_s18 + $0x50] sm:$0xff] }
 0x629   : > { %v3229_v43 = vpop.eup %3228  ;;  %2038 = vmatpush.xpose.msrb.mxu3 %v2029_v63  ;;  %v2155_v54 = vld [vmem:[%s4277_s18 + $0x150] sm:$0xff]  ;;  %v2137_v63 = vld [vmem:[%s4277_s18 + $0xc0] sm:$0xff] }
 0x62a   : > { %v1720_v47 = vmul.f32 %v3229_v43, %v1703_v38  ;;  %v1712_v48 = vsel %vm1711_vm11, %v3227_v36, %v1708_v32  ;;  %vm1725_vm13 = vweird.f32 %v3229_v43  ;;  %v2128_v36 = vld [vmem:[%s4277_s18 + $0x78] sm:$0xff]  ;;  %v2143_v38 = vld [vmem:[%s4277_s18 + $0xf0] sm:$0xff]  ;;  %v2125_v32 = vld [vmem:[%s4277_s18 + $0x60] sm:$0xff] }
 0x62b   : > { %v1717_v49 = vsel %vm1714_vm12, %v1716_v44, %v1712_v48  ;;  %vm1726_vm1 = vmor %vm1724_vm14, %vm1725_vm13  ;;  %2187 = vmatpush.xpose.msrb.mxu0 %v2128_v36  ;;  %2211 = vmatpush.xpose.msrb.mxu1 %v2143_v38  ;;  %v2157_v44 = vld [vmem:[%s4277_s18 + $0x160] sm:$0xff]  ;;  %v2124_v48 = vld [vmem:[%s4277_s18 + $0x58] sm:$0xff] }
 0x62c   : > { %v1721_v50 = vsub.f32 1.0, %v1720_v47  ;;  %v1718_v51 = vmul.f32 %v4482_v4, %v1717_v49  ;;  %v2173_v47 = vld [vmem:[%s4277_s18 + $0x1e0] sm:$0xff]  ;;  %v2140_v49 = vld [vmem:[%s4277_s18 + $0xd8] sm:$0xff]  ;;  %v2114_v36 = vld [vmem:[%s4277_s18 + $0x8] sm:$0xff] }
 0x62d   : > { %2039 = vmatpush.xpose.msrb.mxu3 %v2028_v0  ;;  %v2153_v0 = vld [vmem:[%s4277_s18 + $0x140] sm:$0xff] }
 0x62e   : > { %v1722_v53 = vmul.f32 %v3229_v43, %v1721_v50  ;;  %2988 = vmatmul.msk.f32.vlgmr.msrb.gmra.mxu2 %vm1685_vm0, %v1718_v51  ;;  %v2156_v50 = vld [vmem:[%s4277_s18 + $0x158] sm:$0xff]  ;;  %v2129_v38 = vld [vmem:[%s4277_s18 + $0x80] sm:$0xff] }
 0x62f   : > { %2188 = vmatpush.xpose.msrb.mxu0 %v2127_v16  ;;  %2212 = vmatpush.xpose.msrb.mxu1 %v2142_v42  ;;  %v2172_v51 = vld [vmem:[%s4277_s18 + $0x1d8] sm:$0xff]  ;;  %v2113_v16 = vld [vmem:[%s4277_s18] sm:$0xff] }
 0x630   : > { %v1723_v55 = vadd.f32 %v3229_v43, %v1722_v53  ;;  %v2139_v53 = vld [vmem:[%s4277_s18 + $0xd0] sm:$0xff] }
 0x631   : > { %2040 = vmatpush.xpose.msrb.mxu3 %v2027_v1  ;;  %v2169_v1 = vld [vmem:[%s4277_s18 + $0x1c0] sm:$0xff] }
 0x632   : > { %v1727_v57 = vsel %vm1726_vm1, %v3229_v43, %v1723_v55  ;;  %v2141_v43 = vld [vmem:[%s4277_s18 + $0xe0] sm:$0xff]  ;;  %v2171_v55 = vld [vmem:[%s4277_s18 + $0x1d0] sm:$0xff] }
 0x633   : > { %v1732_v58 = vsel %vm1729_vm2, %v1731_v56, %v1727_v57  ;;  %2189 = vmatpush.xpose.msrb.mxu0 %v2126_v41  ;;  %2213 = vmatpush.xpose.msrb.mxu1 %v2141_v43  ;;  %v2122_v56 = vld [vmem:[%s4277_s18 + $0x48] sm:$0xff] }
 0x634   : > { %v1733_v59 = vmul.f32 %v4486_v5, %v1732_v58  ;;  %v2024_v5 = vld [vmem:[%s4272_s5 + $0x40] sm:$0xff]  ;;  %v2138_v57 = vld [vmem:[%s4277_s18 + $0xc8] sm:$0xff] }
 0x635   : > { %2041 = vmatpush.xpose.msrb.mxu3 %v2026_v2  ;;  %v2154_v58 = vld [vmem:[%s4277_s18 + $0x148] sm:$0xff] }
 0x636   : > { %2989 = vmatmul.msk.f32.vlgmr.msra.gmra.mxu1 %vm1685_vm0, %v1733_v59  ;;  %v2170_v59 = vld [vmem:[%s4277_s18 + $0x1c8] sm:$0xff] }
 0x637   : > { %2190 = vmatpush.xpose.msrb.mxu0 %v2125_v32  ;;  %2214 = vmatpush.xpose.msrb.mxu1 %v2140_v49  ;;  %v4605_v49 = vld [vmem:[%s1124_s28] ss:$0 sm:$0xff] }
 0x639   : > { %2042 = vmatpush.xpose.msrb.mxu3 %v2025_v19  ;;  %v2120_v19 = vld [vmem:[%s4277_s18 + $0x38] sm:$0xff] }
 0x63b   : > { %2191 = vmatpush.xpose.msrb.mxu0 %v2124_v48  ;;  %2215 = vmatpush.xpose.msrb.mxu1 %v2139_v53 }
 0x63d   : > { %2043 = vmatpush.xpose.msrb.mxu3 %v2024_v5  ;;  %v2136_v5 = vld [vmem:[%s4277_s18 + $0xb8] sm:$0xff] }
 0x63f   : > { %2192 = vmatpush.xpose.msrb.mxu0 %v2123_v52  ;;  %2216 = vmatpush.xpose.msrb.mxu1 %v2138_v57  ;;  %v4610_v52 = vld [vmem:[%s1133_s17] ss:$0 sm:$0xff]  ;;  %v2414_v57 = vld [vmem:[%s4279_s15 + $0x1f8] sm:$0xff] }
 0x641   : > { %2044 = vmatpush.xpose.msrb.mxu3 %v2023_v6  ;;  %v2152_v6 = vld [vmem:[%s4277_s18 + $0x138] sm:$0xff] }
 0x643   : > { %2193 = vmatpush.xpose.msrb.mxu0 %v2122_v56  ;;  %2217 = vmatpush.xpose.msrb.mxu1 %v2137_v63  ;;  %v2412_v56 = vld [vmem:[%s4279_s15 + $0x1e8] sm:$0xff]  ;;  %v2410_v63 = vld [vmem:[%s4279_s15 + $0x1d8] sm:$0xff] }
 0x645   : > { %2045 = vmatpush.xpose.msrb.mxu3 %v2022_v7  ;;  %v2168_v7 = vld [vmem:[%s4277_s18 + $0x1b8] sm:$0xff] }
 0x647   : > { %2194 = vmatpush.xpose.msrb.mxu0 %v2121_v62  ;;  %2218 = vmatpush.xpose.msrb.mxu1 %v2136_v5  ;;  %v2409_v62 = vld [vmem:[%s4279_s15 + $0x1d0] sm:$0xff]  ;;  %v2406_v5 = vld [vmem:[%s4279_s15 + $0x1b8] sm:$0xff] }
 0x649   : > { %2046 = vmatpush.xpose.msrb.mxu3 %v2021_v8  ;;  %v2119_v8 = vld [vmem:[%s4277_s18 + $0x30] sm:$0xff] }
 0x64b   : > { %2195 = vmatpush.xpose.msrb.mxu0 %v2120_v19  ;;  %v2405_v19 = vld [vmem:[%s4279_s15 + $0x1b0] sm:$0xff] }
 0x64d   : > { %2047 = vmatpush.xpose.msrb.mxu3 %v2020_v9  ;;  %v2135_v9 = vld [vmem:[%s4277_s18 + $0xb0] sm:$0xff] }
 0x64e   : > { %2219 = vmatpush.xpose.msrb.mxu1 %v2135_v9  ;;  %v2402_v9 = vld [vmem:[%s4279_s15 + $0x198] sm:$0xff] }
 0x64f   : > { %2196 = vmatpush.xpose.msrb.mxu0 %v2119_v8  ;;  %v2401_v8 = vld [vmem:[%s4279_s15 + $0x190] sm:$0xff] }
 0x651   : > { %2048 = vmatpush.xpose.msrb.mxu3 %v2019_v10  ;;  %v2151_v10 = vld [vmem:[%s4277_s18 + $0x130] sm:$0xff] }
 0x655   : > { %2049 = vmatpush.xpose.msrb.mxu3 %v2018_v11  ;;  %v2167_v11 = vld [vmem:[%s4277_s18 + $0x1b0] sm:$0xff] }
 0x659   : > { %2050 = vmatpush.xpose.msrb.mxu3 %v2017_v12  ;;  %v2118_v12 = vld [vmem:[%s4277_s18 + $0x28] sm:$0xff] }
 0x65a   : > { %2197 = vmatpush.xpose.msrb.mxu0 %v2118_v12  ;;  %v2395_v12 = vld [vmem:[%s4279_s15 + $0x160] sm:$0xff] }
 0x65d   : > { %2051 = vmatpush.xpose.msrb.mxu3 %v2016_v13  ;;  %v2134_v13 = vld [vmem:[%s4277_s18 + $0xa8] sm:$0xff] }
 0x65e   : > { %2220 = vmatpush.xpose.msrb.mxu1 %v2134_v13  ;;  %v2396_v13 = vld [vmem:[%s4279_s15 + $0x168] sm:$0xff] }
 0x661   : > { %2256 = vmatpush.xpose.msra.mxu3 %v2176_v37  ;;  %v2162_v37 = vld [vmem:[%s4277_s18 + $0x188] sm:$0xff] }
 0x665   : > { %2257 = vmatpush.xpose.msra.mxu3 %v2175_v40  ;;  %v2161_v40 = vld [vmem:[%s4277_s18 + $0x180] sm:$0xff] }
 0x669   : > { %2258 = vmatpush.xpose.msra.mxu3 %v2174_v30 }
 0x66d   : > { %2259 = vmatpush.xpose.msra.mxu3 %v2173_v47 }
 0x671   : > { %2260 = vmatpush.xpose.msra.mxu3 %v2172_v51 }
 0x675   : > { %2261 = vmatpush.xpose.msra.mxu3 %v2171_v55  ;;  %v2411_v55 = vld [vmem:[%s4279_s15 + $0x1e0] sm:$0xff] }
 0x679   : > { %2262 = vmatpush.xpose.msra.mxu3 %v2170_v59  ;;  %v2407_v59 = vld [vmem:[%s4279_s15 + $0x1c0] sm:$0xff] }
 0x67d   : > { %2263 = vmatpush.xpose.msra.mxu3 %v2169_v1  ;;  %v2403_v1 = vld [vmem:[%s4279_s15 + $0x1a0] sm:$0xff] }
 0x67f   : > { %v1976_v60 = vpop.f32.mrf.mxu3 }
 0x680   : > { %2008 = vrot.lane.b32.xlu0 %v1976_v60, %s3850_s13 }
 0x681   : > { %2264 = vmatpush.xpose.msra.mxu3 %v2168_v7  ;;  %v2400_v7 = vld [vmem:[%s4279_s15 + $0x188] sm:$0xff] }
 0x685   : > { %2265 = vmatpush.xpose.msra.mxu3 %v2167_v11 }
 0x6a9   : > { %v2003_v4 = vpop.f32.mrf.mxu3 }
 0x6aa   : > { %2010 = vrot.lane.b32.xlu1 %v2003_v4, %s3850_s13 }
 0x6b1   : > { %v1754_v14 = vpop.f32.mrf.mxu2 }
 0x6b3   : > { %v1777_v18 = vpop.f32.mrf.mxu1 }
 0x6f2   : > { %v2009_v15 = vpop.permute.xlu0 %2008 }
 0x6f3   : > { %v2014_v17 = vsel %vm1622_vm15, %v1754_v14, %v2009_v15  ;;  %v2150_v14 = vld [vmem:[%s4277_s18 + $0x128] sm:$0xff] }
 0x6f4   : > { %2052 = vmatmul.f32.vlgmr.msrb.gmra.mxu3 %v2014_v17  ;;  %v2166_v15 = vld [vmem:[%s4277_s18 + $0x1a8] sm:$0xff]  ;;  %v2117_v17 = vld [vmem:[%s4277_s18 + $0x20] sm:$0xff] }
 0x6f5   : > { %2266 = vmatpush.xpose.msra.mxu3 %v2166_v15  ;;  %2198 = vmatpush.xpose.msrb.mxu0 %v2117_v17  ;;  %v2398_v15 = vld [vmem:[%s4279_s15 + $0x178] sm:$0xff] }
 0x71c   : > { %v2011_v20 = vpop.permute.xlu1 %2010 }
 0x71d   : > { %v2015_v21 = vsel %vm1622_vm15, %v1777_v18, %v2011_v20  ;;  %v2133_v18 = vld [vmem:[%s4277_s18 + $0xa0] sm:$0xff] }
 0x71e   : > { %2055 = vmatmul.f32.gmra.mxu3 %v2015_v21  ;;  %v2149_v20 = vld [vmem:[%s4277_s18 + $0x120] sm:$0xff]  ;;  %2221 = vmatpush.xpose.msrb.mxu1 %v2133_v18 }
 0x71f   : > { %v2165_v21 = vld [vmem:[%s4277_s18 + $0x1a0] sm:$0xff] }
 0x720   : > { %2267 = vmatpush.xpose.msra.mxu3 %v2165_v21  ;;  %v2392_v21 = vld [vmem:[%s4279_s15 + $0x148] sm:$0xff] }
 0x777   : > { %v2053_v24 = vpop.f32.mrf.mxu3 }
 0x778   : > { %v2054_v25 = vadd.f32 %v3202_v23, %v2053_v24  ;;  %v2132_v24 = vld [vmem:[%s4277_s18 + $0x98] sm:$0xff] }
 0x779   : > { %2222 = vmatpush.xpose.msrb.mxu1 %v2132_v24  ;;  %v2394_v24 = vld [vmem:[%s4279_s15 + $0x158] sm:$0xff] }
 0x77a   : > { %v4519_v26 = vadd.f32 %v2054_v25, %v4282_v45  ;;  %v2148_v25 = vld [vmem:[%s4277_s18 + $0x118] sm:$0xff] }
 0x77c   : > { %2063 = vadd.xlane.f32.xlu2 %v4519_v26 }
 0x7a1   : > { %v2056_v27 = vpop.f32.mrf.mxu3 }
 0x7a2   : > { %v2057_v29 = vadd.f32 %v3202_v23, %v2056_v27  ;;  %v2116_v23 = vld [vmem:[%s4277_s18 + $0x18] sm:$0xff] }
 0x7a3   : > { %2199 = vmatpush.xpose.msrb.mxu0 %v2116_v23  ;;  %v2164_v27 = vld [vmem:[%s4277_s18 + $0x198] sm:$0xff]  ;;  %v2393_v23 = vld [vmem:[%s4279_s15 + $0x150] sm:$0xff] }
 0x7a4   : > { %v4523_v31 = vadd.f32 %v2057_v29, %v4285_v46  ;;  %v2160_v46 = vld [vmem:[%s4277_s18 + $0x178] sm:$0xff]  ;;  %2268 = vmatpush.xpose.msra.mxu3 %v2164_v27  ;;  %v2115_v29 = vld [vmem:[%s4277_s18 + $0x10] sm:$0xff] }
 0x7a5   : > { %2233 = vmatpush.xpose.msra.mxu2 %v2160_v46  ;;  %v2146_v46 = vld [vmem:[%s4277_s18 + $0x108] sm:$0xff] }
 0x7a6   : > { %2065 = vadd.xlane.f32.xlu0 %v4523_v31 }
 0x7a7   : > { %2200 = vmatpush.xpose.msrb.mxu0 %v2115_v29  ;;  %v2387_v29 = vld [vmem:[%s4279_s15 + $0x120] sm:$0xff] }
 0x7a9   : > { %2234 = vmatpush.xpose.msra.mxu2 %v2159_v39  ;;  %v2145_v39 = vld [vmem:[%s4277_s18 + $0x100] sm:$0xff] }
 0x7ab   : > { %2201 = vmatpush.xpose.msrb.mxu0 %v2114_v36 }
 0x7ad   : > { %2235 = vmatpush.xpose.msra.mxu2 %v2158_v28 }
 0x7af   : > { %2202 = vmatpush.xpose.msrb.mxu0 %v2113_v16 }
 0x7b1   : > { %2236 = vmatpush.xpose.msra.mxu2 %v2157_v44 }
 0x7b3   : > { %2419 = vmatpush.xpose.msra.mxu0 %v2411_v55  ;;  %v2369_v55 = vld [vmem:[%s4279_s15 + $0x90] sm:$0xff] }
 0x7b5   : > { %2237 = vmatpush.xpose.msra.mxu2 %v2156_v50 }
 0x7b7   : > { %2420 = vmatpush.xpose.msra.mxu0 %v2407_v59  ;;  %v2366_v59 = vld [vmem:[%s4279_s15 + $0x78] sm:$0xff] }
 0x7b9   : > { %2238 = vmatpush.xpose.msra.mxu2 %v2155_v54 }
 0x7bb   : > { %2421 = vmatpush.xpose.msra.mxu0 %v2403_v1  ;;  %v2352_v1 = vld [vmem:[%s4279_s15 + $0x8] sm:$0xff] }
 0x7bd   : > { %2239 = vmatpush.xpose.msra.mxu2 %v2154_v58 }
 0x7c1   : > { %2240 = vmatpush.xpose.msra.mxu2 %v2153_v0 }
 0x7c5   : > { %2241 = vmatpush.xpose.msra.mxu2 %v2152_v6  ;;  %v2399_v6 = vld [vmem:[%s4279_s15 + $0x180] sm:$0xff] }
 0x7c6   : > { %2422 = vmatpush.xpose.msra.mxu0 %v2399_v6  ;;  %v2353_v6 = vld [vmem:[%s4279_s15 + $0x10] sm:$0xff] }
 0x7c9   : > { %2242 = vmatpush.xpose.msra.mxu2 %v2151_v10 }
 0x7ca   : > { %2423 = vmatpush.xpose.msra.mxu0 %v2395_v12 }
 0x7cd   : > { %2243 = vmatpush.xpose.msra.mxu2 %v2150_v14  ;;  %v2397_v14 = vld [vmem:[%s4279_s15 + $0x170] sm:$0xff] }
 0x7d1   : > { %2244 = vmatpush.xpose.msra.mxu2 %v2149_v20  ;;  %v2391_v20 = vld [vmem:[%s4279_s15 + $0x140] sm:$0xff] }
 0x7d2   : > { %2424 = vmatpush.xpose.msra.mxu0 %v2391_v20 }
 0x7d5   : > { %2245 = vmatpush.xpose.msra.mxu2 %v2148_v25 }
 0x7d6   : > { %2425 = vmatpush.xpose.msra.mxu0 %v2387_v29 }
 0x7ef   : > { %v2064_v33 = vpop.xlane.xlu2 %2063 }
 0x7f0   : > { %v2067_v34 = vmul.f32 %v2064_v33, %v4302_v3  ;;  %v2131_v33 = vld [vmem:[%s4277_s18 + $0x90] sm:$0xff] }
 0x7f1   : > { %2223 = vmatpush.xpose.msrb.mxu1 %v2131_v33  ;;  %v2388_v33 = vld [vmem:[%s4279_s15 + $0x128] sm:$0xff] }
 0x7f2   : > { %v4528_v45 = vsub.f32 %v4519_v26, %v2067_v34  ;;  %v2147_v34 = vld [vmem:[%s4277_s18 + $0x110] sm:$0xff] }
 0x7f3   : > { %2246 = vmatpush.xpose.msra.mxu2 %v2147_v34  ;;  %v2389_v34 = vld [vmem:[%s4279_s15 + $0x130] sm:$0xff] }
 0x7f4   : > { %v2071_v35 = vmul.f32 %v4528_v45, %v4528_v45 }
 0x7f5   : > { %2224 = vmatpush.xpose.msrb.mxu1 %v2130_v22 }
 0x7f6   : > { %2073 = vadd.xlane.f32.xlu1 %v2071_v35  ;;  %v2163_v35 = vld [vmem:[%s4277_s18 + $0x190] sm:$0xff] }
 0x7f7   : > { %2269 = vmatpush.xpose.msra.mxu3 %v2163_v35  ;;  %2247 = vmatpush.xpose.msra.mxu2 %v2146_v46  ;;  %v2390_v35 = vld [vmem:[%s4279_s15 + $0x138] sm:$0xff]  ;;  %v2383_v46 = vld [vmem:[%s4279_s15 + $0x100] sm:$0xff] }
 0x7f8   : > { %2426 = vmatpush.xpose.msra.mxu0 %v2383_v46 }
 0x7f9   : > { %2225 = vmatpush.xpose.msrb.mxu1 %v2129_v38  ;;  %v2385_v38 = vld [vmem:[%s4279_s15 + $0x110] sm:$0xff] }
 0x7fb   : > { %2270 = vmatpush.xpose.msra.mxu3 %v2162_v37  ;;  %2248 = vmatpush.xpose.msra.mxu2 %v2145_v39  ;;  %v2384_v37 = vld [vmem:[%s4279_s15 + $0x108] sm:$0xff]  ;;  %v2386_v39 = vld [vmem:[%s4279_s15 + $0x118] sm:$0xff] }
 0x7fd   : > { %2442 = vmatpush.xpose.msra.mxu1 %v2412_v56  ;;  %v2370_v56 = vld [vmem:[%s4279_s15 + $0x98] sm:$0xff] }
 0x7ff   : > { %2271 = vmatpush.xpose.msra.mxu3 %v2161_v40 }
 0x803   : > { %2488 = vmatpush.xpose.msrb.mxu3 %v2414_v57  ;;  %v2360_v57 = vld [vmem:[%s4279_s15 + $0x48] sm:$0xff] }
 0x807   : > { %2489 = vmatpush.xpose.msrb.mxu3 %v2410_v63  ;;  %v2362_v63 = vld [vmem:[%s4279_s15 + $0x58] sm:$0xff] }
 0x80b   : > { %2490 = vmatpush.xpose.msrb.mxu3 %v2406_v5  ;;  %v4681_v5 = vld [vmem:[%s4257_s0] sm:$0xf] }
 0x80f   : > { %2491 = vmatpush.xpose.msrb.mxu3 %v2402_v9  ;;  %v2180_v9 = vperm.slane %v4681_v5, 1 }
 0x813   : > { %2492 = vmatpush.xpose.msrb.mxu3 %v2398_v15 }
 0x817   : > { %2493 = vmatpush.xpose.msrb.mxu3 %v2394_v24 }
 0x819   : > { %v2066_v60 = vpop.xlane.xlu0 %2065 }
 0x81a   : > { %v2068_v61 = vmul.f32 %v2066_v60, %v4302_v3  ;;  %v2408_v60 = vld [vmem:[%s4279_s15 + $0x1c8] sm:$0xff] }
 0x81b   : > { %2443 = vmatpush.xpose.msra.mxu1 %v2408_v60  ;;  %2494 = vmatpush.xpose.msrb.mxu3 %v2390_v35  ;;  %v2355_v60 = vld [vmem:[%s4279_s15 + $0x20] sm:$0xff] }
 0x81c   : > { %v4566_v2 = vsub.f32 %v4523_v31, %v2068_v61 }
 0x81e   : > { %v2072_v4 = vmul.f32 %v4566_v2, %v4566_v2 }
 0x81f   : > { %2495 = vmatpush.xpose.msrb.mxu3 %v2386_v39 }
 0x820   : > { %2075 = vadd.xlane.f32.xlu2 %v2072_v4  ;;  %v2404_v4 = vld [vmem:[%s4279_s15 + $0x1a8] sm:$0xff] }
 0x821   : > { %2444 = vmatpush.xpose.msra.mxu1 %v2404_v4  ;;  %v2357_v4 = vld [vmem:[%s4279_s15 + $0x30] sm:$0xff] }
 0x825   : > { %2445 = vmatpush.xpose.msra.mxu1 %v2400_v7  ;;  %v2354_v7 = vld [vmem:[%s4279_s15 + $0x18] sm:$0xff] }
 0x829   : > { %2446 = vmatpush.xpose.msra.mxu1 %v2396_v13 }
 0x82d   : > { %2447 = vmatpush.xpose.msra.mxu1 %v2392_v21 }
 0x831   : > { %2448 = vmatpush.xpose.msra.mxu1 %v2388_v33 }
 0x835   : > { %2449 = vmatpush.xpose.msra.mxu1 %v2384_v37 }
 0x869   : > { %v2074_v41 = vpop.xlane.xlu1 %2073 }
 0x86a   : > { %v2077_v42 = vmul.f32 %v2074_v41, %v4302_v3  ;;  %v2379_v41 = vld [vmem:[%s4279_s15 + $0xe0] sm:$0xff] }
 0x86b   : > { %2427 = vmatpush.xpose.msra.mxu0 %v2379_v41 }
 0x86c   : > { %v2079_v28 = vadd.f32 1e-12, %v2077_v42  ;;  %v2381_v42 = vld [vmem:[%s4279_s15 + $0xf0] sm:$0xff] }
 0x86e   : > { %3230 = vrsqrt.f32 %v2079_v28  ;;  %vm2087_vm0 = vweird.f32 %v2079_v28 }
 0x874   : > { %v3231_v30 = vpop.eup %3230 }
 0x875   : > { %v2082_v32 = vmul.f32 %v3231_v30, %v2079_v28  ;;  %vm2088_vm15 = vweird.f32 %v3231_v30  ;;  %v2382_v28 = vld [vmem:[%s4279_s15 + $0xf8] sm:$0xff] }
 0x876   : > { %vm2089_vm3 = vmor %vm2087_vm0, %vm2088_vm15  ;;  %2496 = vmatpush.xpose.msrb.mxu3 %v2382_v28 }
 0x877   : > { %v2083_v43 = vmul.f32 %v3231_v30, %v2082_v32  ;;  %v2376_v32 = vld [vmem:[%s4279_s15 + $0xc8] sm:$0xff] }
 0x879   : > { %v2084_v44 = vmul.f32 0.5, %v2083_v43  ;;  %v2371_v43 = vld [vmem:[%s4279_s15 + $0xa0] sm:$0xff] }
 0x87b   : > { %v2085_v47 = vsub.f32 1.5, %v2084_v44  ;;  %v2372_v44 = vld [vmem:[%s4279_s15 + $0xa8] sm:$0xff] }
 0x87d   : > { %v2086_v48 = vmul.f32 %v3231_v30, %v2085_v47  ;;  %v2377_v47 = vld [vmem:[%s4279_s15 + $0xd0] sm:$0xff] }
 0x87f   : > { %v2090_v50 = vsel %vm2089_vm3, %v3231_v30, %v2086_v48  ;;  %v2375_v30 = vld [vmem:[%s4279_s15 + $0xc0] sm:$0xff]  ;;  %v2378_v48 = vld [vmem:[%s4279_s15 + $0xd8] sm:$0xff] }
 0x880   : > { %v2101_v51 = vmul.f32 %v2090_v50, %v4528_v45  ;;  %v2413_v45 = vld [vmem:[%s4279_s15 + $0x1f0] sm:$0xff]  ;;  %2428 = vmatpush.xpose.msra.mxu0 %v2375_v30  ;;  %2497 = vmatpush.xpose.msrb.mxu3 %v2378_v48  ;;  %v2368_v50 = vld [vmem:[%s4279_s15 + $0x88] sm:$0xff] }
 0x881   : > { %2465 = vmatpush.xpose.msrb.mxu2 %v2413_v45  ;;  %v2359_v45 = vld [vmem:[%s4279_s15 + $0x40] sm:$0xff] }
 0x882   : > { %v2106_v53 = vmul.f32 %v4605_v49, %v2101_v51  ;;  %v2373_v51 = vld [vmem:[%s4279_s15 + $0xb0] sm:$0xff] }
 0x884   : > { %v2111_v54 = vadd.f32 %v4610_v52, %v2106_v53  ;;  %2429 = vmatpush.xpose.msra.mxu0 %v2371_v43  ;;  %v2363_v53 = vld [vmem:[%s4279_s15 + $0x60] sm:$0xff] }
 0x885   : > { %2466 = vmatpush.xpose.msrb.mxu2 %v2409_v62  ;;  %v2361_v62 = vld [vmem:[%s4279_s15 + $0x50] sm:$0xff] }
 0x886   : > { %2203 = vmatmul.f32.vlgmr.msrb.gmra.mxu0 %v2111_v54  ;;  %2226 = vmatmul.f32.vlgmr.msrb.gmra.mxu1 %v2111_v54 }
 0x887   : > { %2249 = vmatmul.f32.vlgmr.msra.gmra.mxu2 %v2111_v54  ;;  %2272 = vmatmul.f32.vlgmr.msra.gmra.mxu3 %v2111_v54  ;;  %v2364_v54 = vld [vmem:[%s4279_s15 + $0x68] sm:$0xff] }
 0x889   : > { %2467 = vmatpush.xpose.msrb.mxu2 %v2405_v19  ;;  %v2358_v19 = vld [vmem:[%s4279_s15 + $0x38] sm:$0xff] }
 0x88d   : > { %2468 = vmatpush.xpose.msrb.mxu2 %v2401_v8  ;;  %v2179_v8 = vperm.slane %v4681_v5, 0 }
 0x891   : > { %2469 = vmatpush.xpose.msrb.mxu2 %v2397_v14 }
 0x893   : > { %v2076_v58 = vpop.xlane.xlu2 %2075 }
 0x894   : > { %v2078_v61 = vmul.f32 %v2076_v58, %v4302_v3  ;;  %v2365_v58 = vld [vmem:[%s4279_s15 + $0x70] sm:$0xff] }
 0x895   : > { %2470 = vmatpush.xpose.msrb.mxu2 %v2393_v23 }
 0x896   : > { %v2080_v0 = vadd.f32 1e-12, %v2078_v61  ;;  %v2356_v61 = vld [vmem:[%s4279_s15 + $0x28] sm:$0xff] }
 0x898   : > { %3232 = vrsqrt.f32 %v2080_v0  ;;  %vm2097_vm5 = vweird.f32 %v2080_v0 }
 0x899   : > { %2471 = vmatpush.xpose.msrb.mxu2 %v2389_v34 }
 0x89d   : > { %2472 = vmatpush.xpose.msrb.mxu2 %v2385_v38 }
 0x89e   : > { %v3233_v10 = vpop.eup %3232 }
 0x89f   : > { %v2092_v11 = vmul.f32 %v3233_v10, %v2080_v0  ;;  %vm2098_vm4 = vweird.f32 %v3233_v10  ;;  %v2351_v0 = vld [vmem:[%s4279_s15] sm:$0xff] }
 0x8a0   : > { %vm2099_vm6 = vmor %vm2097_vm5, %vm2098_vm4 }
 0x8a1   : > { %v2093_v17 = vmul.f32 %v3233_v10, %v2092_v11  ;;  %2473 = vmatpush.xpose.msrb.mxu2 %v2381_v42 }
 0x8a3   : > { %v2094_v18 = vmul.f32 0.5, %v2093_v17  ;;  %v2181_v17 = vperm.slane %v4681_v5, 2 }
 0x8a5   : > { %v2095_v25 = vsub.f32 1.5, %v2094_v18  ;;  %2474 = vmatpush.xpose.msrb.mxu2 %v2377_v47  ;;  %v2182_v18 = vperm.slane %v4681_v5, 3 }
 0x8a7   : > { %v2096_v27 = vmul.f32 %v3233_v10, %v2095_v25 }
 0x8a9   : > { %v2100_v36 = vsel %vm2099_vm6, %v3233_v10, %v2096_v27  ;;  %2475 = vmatpush.xpose.msrb.mxu2 %v2373_v51 }
 0x8aa   : > { %v2102_v22 = vmul.f32 %v2100_v36, %v4566_v2  ;;  %v2380_v2 = vld [vmem:[%s4279_s15 + $0xe8] sm:$0xff] }
 0x8ab   : > { %2450 = vmatpush.xpose.msra.mxu1 %v2380_v2 }
 0x8ac   : > { %v2107_v16 = vmul.f32 %v4605_v49, %v2102_v22  ;;  %v2367_v49 = vld [vmem:[%s4279_s15 + $0x80] sm:$0xff] }
 0x8ad   : > { %2430 = vmatpush.xpose.msra.mxu0 %v2367_v49  ;;  %2476 = vmatpush.xpose.msrb.mxu2 %v2369_v55 }
 0x8ae   : > { %v2112_v40 = vadd.f32 %v4610_v52, %v2107_v16  ;;  %v2374_v52 = vld [vmem:[%s4279_s15 + $0xb8] sm:$0xff] }
 0x8af   : > { %2451 = vmatpush.xpose.msra.mxu1 %v2376_v32  ;;  %2498 = vmatpush.xpose.msrb.mxu3 %v2374_v52 }
 0x8b0   : > { %2206 = vmatmul.f32.gmra.mxu0 %v2112_v40  ;;  %2229 = vmatmul.f32.gmra.mxu1 %v2112_v40 }
 0x8b1   : > { %2252 = vmatmul.f32.gmra.mxu2 %v2112_v40  ;;  %2275 = vmatmul.f32.gmra.mxu3 %v2112_v40 }
 0x8b2   : > { %2431 = vmatpush.xpose.msra.mxu0 %v2363_v53  ;;  %2477 = vmatpush.xpose.msrb.mxu2 %v2365_v58 }
 0x8b3   : > { %2452 = vmatpush.xpose.msra.mxu1 %v2372_v44  ;;  %2499 = vmatpush.xpose.msrb.mxu3 %v2370_v56 }
 0x8b6   : > { %2432 = vmatpush.xpose.msra.mxu0 %v2359_v45  ;;  %2478 = vmatpush.xpose.msrb.mxu2 %v2361_v62 }
 0x8b7   : > { %2453 = vmatpush.xpose.msra.mxu1 %v2368_v50  ;;  %2500 = vmatpush.xpose.msrb.mxu3 %v2366_v59 }
 0x8ba   : > { %2433 = vmatpush.xpose.msra.mxu0 %v2355_v60  ;;  %2479 = vmatpush.xpose.msrb.mxu2 %v2357_v4 }
 0x8bb   : > { %2454 = vmatpush.xpose.msra.mxu1 %v2364_v54  ;;  %2501 = vmatpush.xpose.msrb.mxu3 %v2362_v63 }
 0x8be   : > { %2434 = vmatpush.xpose.msra.mxu0 %v2351_v0  ;;  %2480 = vmatpush.xpose.msrb.mxu2 %v2353_v6 }
 0x8bf   : > { %2455 = vmatpush.xpose.msra.mxu1 %v2360_v57  ;;  %2502 = vmatpush.xpose.msrb.mxu3 %v2358_v19 }
 0x8c3   : > { %2456 = vmatpush.xpose.msra.mxu1 %v2356_v61  ;;  %2503 = vmatpush.xpose.msrb.mxu3 %v2354_v7 }
 0x8c7   : > { %2457 = vmatpush.xpose.msra.mxu1 %v2352_v1 }
 0x903   : > { %v2204_v10 = vpop.f32.mrf.mxu0  ;;  %v2227_v11 = vpop.f32.mrf.mxu1 }
 0x904   : > { %v2205_v12 = vadd.f32 %v2204_v10, %v2179_v8  ;;  %v2228_v13 = vadd.f32 %v2227_v11, %v2180_v9 }
 0x906   : > { %v2287_v14 = vmul.f32 %v2205_v12, %v2205_v12  ;;  %v2288_v15 = vmul.f32 %v2228_v13, %v2228_v13  ;;  %v2279_v43 = vmul.f32 0.5, %v2205_v12  ;;  %v2280_v47 = vmul.f32 0.5, %v2228_v13 }
 0x908   : > { %v2295_v20 = vmul.f32 %v2287_v14, %v2205_v12  ;;  %v2296_v21 = vmul.f32 %v2288_v15, %v2228_v13 }
 0x90a   : > { %v2303_v23 = vmul.f32 0.044715, %v2295_v20  ;;  %v2304_v24 = vmul.f32 0.044715, %v2296_v21  ;;  %v2250_v25 = vpop.f32.mrf.mxu2  ;;  %v2273_v27 = vpop.f32.mrf.mxu3 }
 0x90b   : > { %v2251_v29 = vadd.f32 %v2250_v25, %v2181_v17  ;;  %v2274_v33 = vadd.f32 %v2273_v27, %v2182_v18 }
 0x90c   : > { %v2311_v34 = vadd.f32 %v2303_v23, %v2205_v12  ;;  %v2312_v35 = vadd.f32 %v2304_v24, %v2228_v13 }
 0x90d   : > { %v2289_v36 = vmul.f32 %v2251_v29, %v2251_v29  ;;  %v2290_v22 = vmul.f32 %v2274_v33, %v2274_v33  ;;  %v2281_v53 = vmul.f32 0.5, %v2251_v29  ;;  %v2282_v55 = vmul.f32 0.5, %v2274_v33 }
 0x90e   : > { %v2319_v46 = vmul.f32 0.7978846, %v2311_v34  ;;  %v2320_v37 = vmul.f32 0.7978846, %v2312_v35 }
 0x90f   : > { %v2297_v16 = vmul.f32 %v2289_v36, %v2251_v29  ;;  %v2298_v38 = vmul.f32 %v2290_v22, %v2274_v33 }
 0x910   : > { %3234 = vtanh.f32 %v2319_v46 }
 0x911   : > { %3236 = vtanh.f32 %v2320_v37  ;;  %v2305_v39 = vmul.f32 0.044715, %v2297_v16  ;;  %v2306_v40 = vmul.f32 0.044715, %v2298_v38 }
 0x913   : > { %v2313_v41 = vadd.f32 %v2305_v39, %v2251_v29  ;;  %v2314_v2 = vadd.f32 %v2306_v40, %v2274_v33 }
 0x915   : > { %v2321_v42 = vmul.f32 0.7978846, %v2313_v41  ;;  %v2322_v28 = vmul.f32 0.7978846, %v2314_v2 }
 0x916   : > { %v3235_v30 = vpop.eup %3234 }
 0x917   : > { %v3237_v32 = vpop.eup %3236  ;;  %3238 = vtanh.f32 %v2321_v42  ;;  %v2335_v44 = vadd.f32 1.0, %v3235_v30 }
 0x918   : > { %3240 = vtanh.f32 %v2322_v28  ;;  %v2336_v48 = vadd.f32 1.0, %v3237_v32  ;;  %v3205_v28 = vld [vmem:[%s1300_s16] ss:$0 sm:$0xff] }
 0x919   : > { %v2343_v49 = vmul.f32 %v2335_v44, %v2279_v43 }
 0x91a   : > { %v2344_v50 = vmul.f32 %v2336_v48, %v2280_v47 }
 0x91b   : > { %2435 = vmatmul.f32.vlgmr.msra.gmra.mxu0 %v2343_v49 }
 0x91c   : > { %2458 = vmatmul.f32.vlgmr.msra.gmra.mxu1 %v2344_v50 }
 0x91d   : > { %v3239_v51 = vpop.eup %3238 }
 0x91e   : > { %v3241_v52 = vpop.eup %3240  ;;  %v2337_v54 = vadd.f32 1.0, %v3239_v51 }
 0x91f   : > { %v2338_v56 = vadd.f32 1.0, %v3241_v52 }
 0x920   : > { %v2345_v45 = vmul.f32 %v2337_v54, %v2281_v53 }
 0x921   : > { %v2346_v57 = vmul.f32 %v2338_v56, %v2282_v55 }
 0x922   : > { %2481 = vmatmul.f32.vlgmr.msrb.gmra.mxu2 %v2345_v45 }
 0x923   : > { %2504 = vmatmul.f32.vlgmr.msrb.gmra.mxu3 %v2346_v57 }
 0x92d   : > { %v2207_v58 = vpop.f32.mrf.mxu0  ;;  %v2230_v59 = vpop.f32.mrf.mxu1 }
 0x92e   : > { %v2208_v60 = vadd.f32 %v2207_v58, %v2179_v8  ;;  %v2231_v61 = vadd.f32 %v2230_v59, %v2180_v9 }
 0x930   : > { %v2291_v62 = vmul.f32 %v2208_v60, %v2208_v60  ;;  %v2292_v63 = vmul.f32 %v2231_v61, %v2231_v61  ;;  %v2284_v35 = vmul.f32 0.5, %v2231_v61 }
 0x932   : > { %v2299_v0 = vmul.f32 %v2291_v62, %v2208_v60  ;;  %v2300_v1 = vmul.f32 %v2292_v63, %v2231_v61 }
 0x934   : > { %v2253_v4 = vpop.f32.mrf.mxu2  ;;  %v2276_v19 = vpop.f32.mrf.mxu3  ;;  %v2307_v5 = vmul.f32 0.044715, %v2299_v0  ;;  %v2308_v6 = vmul.f32 0.044715, %v2300_v1 }
 0x935   : > { %v2254_v7 = vadd.f32 %v2253_v4, %v2181_v17  ;;  %v2277_v10 = vadd.f32 %v2276_v19, %v2182_v18  ;;  %v2283_v17 = vmul.f32 0.5, %v2208_v60 }
 0x936   : > { %v2315_v11 = vadd.f32 %v2307_v5, %v2208_v60  ;;  %v2316_v12 = vadd.f32 %v2308_v6, %v2231_v61 }
 0x937   : > { %v2293_v13 = vmul.f32 %v2254_v7, %v2254_v7  ;;  %v2294_v14 = vmul.f32 %v2277_v10, %v2277_v10  ;;  %v2285_v38 = vmul.f32 0.5, %v2254_v7  ;;  %v2286_v40 = vmul.f32 0.5, %v2277_v10 }
 0x938   : > { %v2323_v15 = vmul.f32 0.7978846, %v2315_v11  ;;  %v2324_v20 = vmul.f32 0.7978846, %v2316_v12 }
 0x939   : > { %v2301_v21 = vmul.f32 %v2293_v13, %v2254_v7  ;;  %v2302_v23 = vmul.f32 %v2294_v14, %v2277_v10  ;;  %v3206_v14 = vld [vmem:[%s1303_s2] ss:$0 sm:$0xff]  ;;  %s2575_s2 = sshll.u32 %s3851_s14, 4  ;;  %s2576_s2 = int_to_ptr.vmem [resolvable:$true] %s2575_s2 }
 0x93a   : > { %3242 = vtanh.f32 %v2323_v15 }
 0x93b   : > { %3244 = vtanh.f32 %v2324_v20  ;;  %v2309_v8 = vmul.f32 0.044715, %v2301_v21  ;;  %v2310_v9 = vmul.f32 0.044715, %v2302_v23  ;;  %v3207_v21 = vld [vmem:[%s1306_s25] ss:$0 sm:$0xff] }
 0x93d   : > { %v2317_v24 = vadd.f32 %v2309_v8, %v2254_v7  ;;  %v2318_v25 = vadd.f32 %v2310_v9, %v2277_v10 }
 0x93f   : > { %v2325_v27 = vmul.f32 0.7978846, %v2317_v24  ;;  %v2326_v29 = vmul.f32 0.7978846, %v2318_v25 }
 0x940   : > { %v3243_v33 = vpop.eup %3242 }
 0x941   : > { %v3245_v34 = vpop.eup %3244  ;;  %v2339_v18 = vadd.f32 1.0, %v3243_v33  ;;  %3246 = vtanh.f32 %v2325_v27 }
 0x942   : > { %v2340_v36 = vadd.f32 1.0, %v3245_v34  ;;  %3248 = vtanh.f32 %v2326_v29 }
 0x943   : > { %v2347_v22 = vmul.f32 %v2339_v18, %v2283_v17 }
 0x944   : > { %v2348_v46 = vmul.f32 %v2340_v36, %v2284_v35 }
 0x945   : > { %2438 = vmatmul.f32.gmra.mxu0 %v2347_v22 }
 0x946   : > { %2461 = vmatmul.f32.gmra.mxu1 %v2348_v46 }
 0x947   : > { %v3247_v37 = vpop.eup %3246 }
 0x948   : > { %v3249_v16 = vpop.eup %3248  ;;  %v2341_v39 = vadd.f32 1.0, %v3247_v37 }
 0x949   : > { %v2342_v41 = vadd.f32 1.0, %v3249_v16 }
 0x94a   : > { %v2349_v2 = vmul.f32 %v2341_v39, %v2285_v38 }
 0x94b   : > { %v2350_v42 = vmul.f32 %v2342_v41, %v2286_v40 }
 0x94c   : > { %2484 = vmatmul.f32.gmra.mxu2 %v2349_v2 }
 0x94d   : > { %2507 = vmatmul.f32.gmra.mxu3 %v2350_v42 }
 0x998   : > { %v2436_v30 = vpop.f32.mrf.mxu0 }
 0x999   : > { %v2437_v32 = vadd.f32 %v3205_v28, %v2436_v30  ;;  %v2459_v43 = vpop.f32.mrf.mxu1 }
 0x99b   : > { %v2460_v44 = vadd.f32 %v2459_v43, %v2437_v32 }
 0x9a5   : > { %v2482_v47 = vpop.f32.mrf.mxu2 }
 0x9a6   : > { %v2483_v48 = vadd.f32 %v2482_v47, %v2460_v44  ;;  %v2505_v49 = vpop.f32.mrf.mxu3 }
 0x9a8   : > { %v2506_v50 = vadd.f32 %v2505_v49, %v2483_v48 }
 0x9aa   : > { %v2511_v51 = vadd.f32 %v2506_v50, %v4519_v26 }
 0x9ac   : > { %2515 = vadd.xlane.f32.xlu0 %v2511_v51 }
 0x9c2   : > { %v2439_v52 = vpop.f32.mrf.mxu0 }
 0x9c3   : > { %v2440_v53 = vadd.f32 %v3205_v28, %v2439_v52  ;;  %v2462_v54 = vpop.f32.mrf.mxu1 }
 0x9c5   : > { %v2463_v55 = vadd.f32 %v2462_v54, %v2440_v53 }
 0x9cf   : > { %v2485_v56 = vpop.f32.mrf.mxu2 }
 0x9d0   : > { %v2486_v45 = vadd.f32 %v2485_v56, %v2463_v55  ;;  %v2508_v57 = vpop.f32.mrf.mxu3 }
 0x9d2   : > { %v2509_v58 = vadd.f32 %v2508_v57, %v2486_v45 }
 0x9d4   : > { %v2512_v59 = vadd.f32 %v2509_v58, %v4523_v31 }
 0x9d6   : > { %2517 = vadd.xlane.f32.xlu2 %v2512_v59 }
 0xa1f   : > { %v2516_v60 = vpop.xlane.xlu0 %2515 }
 0xa20   : > { %v2519_v61 = vmul.f32 %v2516_v60, %v4302_v3 }
 0xa22   : > { %v2521_v62 = vsub.f32 %v2511_v51, %v2519_v61 }
 0xa24   : > { %v2523_v63 = vmul.f32 %v2521_v62, %v2521_v62 }
 0xa26   : > { %2525 = vadd.xlane.f32.xlu0 %v2523_v63 }
 0xa49   : > { %v2518_v0 = vpop.xlane.xlu2 %2517 }
 0xa4a   : > { %v2520_v26 = vmul.f32 %v2518_v0, %v4302_v3 }
 0xa4c   : > { %v2522_v1 = vsub.f32 %v2512_v59, %v2520_v26 }
 0xa4e   : > { %v2524_v4 = vmul.f32 %v2522_v1, %v2522_v1 }
 0xa50   : > { %2527 = vadd.xlane.f32.xlu2 %v2524_v4 }
 0xa99   : > { %v2526_v19 = vpop.xlane.xlu0 %2525 }
 0xa9a   : > { %v2529_v5 = vmul.f32 %v2526_v19, %v4302_v3 }
 0xa9c   : > { %v2531_v6 = vadd.f32 1e-12, %v2529_v5 }
 0xa9e   : > { %3250 = vrsqrt.f32 %v2531_v6  ;;  %vm2539_vm8 = vweird.f32 %v2531_v6 }
 0xaa4   : > { %v3251_v31 = vpop.eup %3250 }
 0xaa5   : > { %v2534_v7 = vmul.f32 %v3251_v31, %v2531_v6  ;;  %vm2540_vm7 = vweird.f32 %v3251_v31 }
 0xaa6   : > { %vm2541_vm9 = vmor %vm2539_vm8, %vm2540_vm7 }
 0xaa7   : > { %v2535_v10 = vmul.f32 %v3251_v31, %v2534_v7 }
 0xaa9   : > { %v2536_v11 = vmul.f32 0.5, %v2535_v10 }
 0xaab   : > { %v2537_v12 = vsub.f32 1.5, %v2536_v11 }
 0xaad   : > { %v2538_v13 = vmul.f32 %v3251_v31, %v2537_v12 }
 0xaaf   : > { %v2542_v15 = vsel %vm2541_vm9, %v3251_v31, %v2538_v13 }
 0xab0   : > { %v2553_v20 = vmul.f32 %v2542_v15, %v2521_v62 }
 0xab2   : > { %v2558_v23 = vmul.f32 %v3206_v14, %v2553_v20 }
 0xab4   : > { %v2563_v8 = vadd.f32 %v3207_v21, %v2558_v23 }
 0xab6   : > { %2565 = vst [vmem:[#allocation23] sm:$0xff] %v2563_v8 }
 0xac3   : > { %v2528_v9 = vpop.xlane.xlu2 %2527 }
 0xac4   : > { %v2530_v24 = vmul.f32 %v2528_v9, %v4302_v3 }
 0xac6   : > { %v2532_v25 = vadd.f32 1e-12, %v2530_v24 }
 0xac8   : > { %3252 = vrsqrt.f32 %v2532_v25  ;;  %vm2549_vm11 = vweird.f32 %v2532_v25 }
 0xace   : > { %v3253_v27 = vpop.eup %3252 }
 0xacf   : > { %v2544_v29 = vmul.f32 %v3253_v27, %v2532_v25  ;;  %vm2550_vm10 = vweird.f32 %v3253_v27 }
 0xad0   : > { %vm2551_vm12 = vmor %vm2549_vm11, %vm2550_vm10 }
 0xad1   : > { %v2545_v33 = vmul.f32 %v3253_v27, %v2544_v29 }
 0xad3   : > { %v2546_v34 = vmul.f32 0.5, %v2545_v33 }
 0xad5   : > { %v2547_v17 = vsub.f32 1.5, %v2546_v34 }
 0xad7   : > { %v2548_v18 = vmul.f32 %v3253_v27, %v2547_v17 }
 0xad9   : > { %v2552_v35 = vsel %vm2551_vm12, %v3253_v27, %v2548_v18 }
 0xada   : > { %v2554_v36 = vmul.f32 %v2552_v35, %v2522_v1 }
 0xadc   : > { %v2559_v3 = vmul.f32 %v3206_v14, %v2554_v36 }
 0xade   : > { %v2564_v22 = vadd.f32 %v3207_v21, %v2559_v3 }
 0xae0   : > { %2566 = vst [vmem:[#allocation23 + $0x8] sm:$0xff] %v2564_v22 }
 0xae1   : > { %3051 = dma.vmem_to_hbm [thread:$0]  (%p3117_p3), %s2576_s2, 256, %s2578_s9, [#allocation4], %s3852_s30, %s3852_s30, %s3853_s24  }
 0xae2   : > { %3807 = dma.done.wait (%p3117_p3), [#allocation4], 256  }
 0xae3   : > { %3809 = vsyncadd (%p3117_p3), [#allocation4], 4294967040 }
 0xae4 PF: > { %s4838_s12 = sld [smem:[#allocation32_spill]]  ;;  %s4842_s5 = smov %s3816_s26 }
 0xae5   : > { %s4839_s27 = sld [smem:[#allocation30_spill]]  ;;  %s4845_s28 = smov %s3828_s6 }
 0xae6   : > { %s4840_s23 = sld [smem:[#allocation34_spill]] }
 0xae7   : > { %s4841_s7 = sld [smem:[#allocation33_spill]] }
 0xaea   : > { %s39_s2 = sadd.s32 1, %s4838_s12  }
 0xaeb   : > { %p36_p4 = scmp.ge.s32.totalorder %s39_s2, 4   ;;  %s4843_s26 = smov %s4839_s27 }
 0xaec   : > { %s4844_s27 = smov %s4840_s23 }
 0xaed   : > { %s4846_s6 = smov %s4841_s7  ;;  %38 = sbr.rel (!%p36_p4) target bundleno = 32 (0x20), region = 306 }
 0xaf2   :  { %2594 = vsyncpa [#allocation3], 1 }
 0xaf3   :  { %2596 = vsyncpa [#allocation3 + $0x1], 1 }
 0xaf4   :  { %2597 = vsyncpa [#allocation6], 1 }
 0xaf5   :  { %2598 = vsyncpa [#allocation9], 1 }
 0xaf6   :  { %2599 = vsyncpa [#allocation12], 1 }
 0xaf7   :  { %2600 = vsyncpa [#allocation4], 1 }
 0xaf8   :  { %2602 = vsyncpa [#allocation4 + $0x1], 1 }

</bundles_post_ra>
